<compile_context>
chip_gen: v7x
topology: tpu7x:2x2x1
jax: 0.10.0
libtpu: 0.0.40
codegen_flags: <defaults>
</compile_context>

<pallas_src>
import jax
import jax.numpy as jnp
from jax import lax
from jax.experimental import pallas as pl
from jax.experimental.pallas import tpu as pltpu

_LANE = 128


def _round_up(x, m):
    return (x + m - 1) // m * m


def _make_kernel(Ho, Wo, Cin, ct):
    def kernel(x00_ref, x01_ref, x10_ref, x11_ref, w_ref, o_ref):
        # x{p}{q}_ref: (1, Ho+1, Wo+1, Cin) stride-2 phase of the padded image
        #              (row parity p, col parity q), resident for this batch n.
        # w_ref:       (3, 3, Cin, CT) weight taps for this out-channel tile.
        # o_ref:       (1, Ho, Wo, CT) lane-dense output tile.
        ph = ((x00_ref, x01_ref), (x10_ref, x11_ref))

        def compute_row(r):
            acc = jnp.zeros((Wo, ct), jnp.float32)
            for kh in range(3):
                for kw in range(3):
                    # Padded-input pixel (2*ho+kh, 2*wo+kw) lives in phase
                    # (kh%2, kw%2) at index (ho + kh//2, wo + kw//2).
                    tap = ph[kh % 2][kw % 2][0, r + kh // 2,
                                             kw // 2:kw // 2 + Wo, :]  # (Wo,Cin)
                    acc = acc + jnp.dot(tap, w_ref[kh, kw],
                                        preferred_element_type=jnp.float32)
            o_ref[0, r] = acc.astype(o_ref.dtype)

        if Ho <= 16:
            for r in range(Ho):            # static unroll for small images
                compute_row(r)
        else:
            def body(r, carry):
                compute_row(r)
                return carry
            lax.fori_loop(0, Ho, body, 0)

    return kernel


def conv3x3_s2_p1(x_nchw, weight_oihw, *, compute_dtype=jnp.bfloat16):
    """3x3 conv, stride 2, padding 1, no bias.  x: (N,Cin,H,W), w: (Cout,Cin,3,3)."""
    N, Cin, H, W = x_nchw.shape
    Cout = weight_oihw.shape[0]
    Ho = (H + 2 - 3) // 2 + 1
    Wo = (W + 2 - 3) // 2 + 1
    out_dtype = x_nchw.dtype

    # Lane-dense output-channel tile: 256 fills the 2x256 MXU (v6e/v7x) when
    # the padded Cout allows it; 128 otherwise (v5e's MXU is 128 wide anyway).
    cout_pad = _round_up(Cout, _LANE)
    ct = 256 if cout_pad % 256 == 0 else _LANE
    n_cblk = cout_pad // ct

    # ---- wrapper glue: pure layout plumbing, fused by XLA into ~one pass ----
    # NCHW -> NHWC, zero-pad spatial by 1 (padded up to even extents so the
    # four stride-2 phases are equal-shaped; the extra zeros contribute 0),
    # cast to the compute dtype, split into 4 (row-parity, col-parity) phases.
    x = jnp.transpose(x_nchw, (0, 2, 3, 1)).astype(compute_dtype)
    Hp = _round_up(H + 2, 2)
    Wp = _round_up(W + 2, 2)
    x = jnp.pad(x, ((0, 0), (1, Hp - H - 1), (1, Wp - W - 1), (0, 0)))
    phases = [x[:, p::2, q::2, :] for p in range(2) for q in range(2)]
    Hq, Wq = Hp // 2, Wp // 2          # == Ho + 1, Wo + 1

    # Weight taps as (3, 3, Cin, Cout_pad) in the compute dtype.
    w = jnp.transpose(weight_oihw, (2, 3, 1, 0))
    if cout_pad != Cout:
        w = jnp.pad(w, ((0, 0), (0, 0), (0, 0), (0, cout_pad - Cout)))
    w = w.astype(compute_dtype)

    kernel = _make_kernel(Ho, Wo, Cin, ct)

    phase_spec = pl.BlockSpec((1, Hq, Wq, Cin), lambda n, j: (n, 0, 0, 0))
    w_spec = pl.BlockSpec((3, 3, Cin, ct), lambda n, j: (0, 0, 0, j))
    out_spec = pl.BlockSpec((1, Ho, Wo, ct), lambda n, j: (n, 0, 0, j))

    itemsize = jnp.dtype(compute_dtype).itemsize
    cost = pl.CostEstimate(
        flops=2 * N * Ho * Wo * 9 * Cin * cout_pad,
        transcendentals=0,
        bytes_accessed=(4 * N * Hq * Wq * Cin * itemsize
                        + 9 * Cin * cout_pad * itemsize
                        + N * Ho * Wo * cout_pad * jnp.dtype(out_dtype).itemsize))

    # VMEM: 4 double-buffered phase blocks + weight tile + output tile.  For
    # these shapes that is <1 MiB; the 32 MiB scoped limit is safe on every
    # generation (<= v7x's 64 MiB physical VMEM).
    # TODO(synk): for very large images (whole-image phase blocks approaching
    # the VMEM limit) tile Ho across the grid with a manual halo DMA.
    out = pl.pallas_call(
        kernel,
        out_shape=jax.ShapeDtypeStruct((N, Ho, Wo, cout_pad), out_dtype),
        grid_spec=pltpu.PrefetchScalarGridSpec(
            num_scalar_prefetch=0,
            grid=(N, n_cblk),
            in_specs=[phase_spec] * 4 + [w_spec],
            out_specs=out_spec,
        ),
        compiler_params=pltpu.CompilerParams(
            dimension_semantics=("parallel", "parallel"),
            vmem_limit_bytes=32 * 1024 * 1024),
        cost_estimate=cost,
    )(*phases, w)

    if cout_pad != Cout:
        out = out[..., :Cout]
    # NHWC -> NCHW only because the PyTorch module's API is NCHW; an
    # NHWC-native caller could drop both transposes.
    return jnp.transpose(out, (0, 3, 1, 2))


if __name__ == "__main__":
    # Small shapes consistent with the module: batch=2, in_planes=4,
    # out_planes=8, spatial=16x16  ->  output (2, 8, 8, 8).
    N, Cin, Cout, H, W = 2, 4, 8, 16, 16

    key = jax.random.PRNGKey(0)
    kx, kw = jax.random.split(key)
    x = jax.random.normal(kx, (N, Cin, H, W), dtype=jnp.float32)
    # Deterministic Kaiming-uniform-like init for Conv2d weight (OIHW).
    fan_in = Cin * 3 * 3
    bound = 1.0 / (fan_in ** 0.5)
    weight = jax.random.uniform(kw, (Cout, Cin, 3, 3), dtype=jnp.float32,
                                minval=-bound, maxval=bound)

    out = jax.jit(conv3x3_s2_p1)(x, weight)
    out = jax.block_until_ready(out)
    assert out.shape == (N, Cout, H // 2, W // 2), out.shape

    # Reference with the same bf16 input quantization (both accumulate in f32;
    # any difference is summation order only).
    xq = x.astype(jnp.bfloat16).astype(jnp.float32)
    wq = weight.astype(jnp.bfloat16).astype(jnp.float32)
    ref = jax.lax.conv_general_dilated(
        xq, wq, window_strides=(2, 2), padding=((1, 1), (1, 1)),
        dimension_numbers=("NCHW", "OIHW", "NCHW"))
    assert jnp.allclose(out, ref, atol=1e-3, rtol=1e-3), (
        float(jnp.max(jnp.abs(out - ref))))

    # Loose sanity check against the full-f32 conv (bf16 quantization error).
    ref_f32 = jax.lax.conv_general_dilated(
        x, weight, window_strides=(2, 2), padding=((1, 1), (1, 1)),
        dimension_numbers=("NCHW", "OIHW", "NCHW"))
    assert float(jnp.max(jnp.abs(out - ref_f32))) < 1e-1

    print("KERNEL_OK")
</pallas_src>

<mosaic_0001>
module attributes {stable_mosaic.version = 11 : i64} {
  func.func @kernel(%arg0: i32, %arg1: i32, %arg2: memref<1x9x9x4xbf16, #tpu.memory_space<vmem>>, %arg3: memref<1x9x9x4xbf16, #tpu.memory_space<vmem>>, %arg4: memref<1x9x9x4xbf16, #tpu.memory_space<vmem>>, %arg5: memref<1x9x9x4xbf16, #tpu.memory_space<vmem>>, %arg6: memref<3x3x4x128xbf16, #tpu.memory_space<vmem>>, %arg7: memref<1x8x8x128xf32, #tpu.memory_space<vmem>>) attributes {dimension_semantics = [#tpu.dimension_semantics<parallel>, #tpu.dimension_semantics<parallel>], iteration_bounds = array<i64: 2, 1>, scalar_prefetch = 0 : i64, scratch_operands = 0 : i64, tpu.core_type = #tpu.core_type<tc>, window_params = [{transform_indices = @transform_0, window_bounds = array<i64: 1, 9, 9, 4>}, {transform_indices = @transform_1, window_bounds = array<i64: 1, 9, 9, 4>}, {transform_indices = @transform_2, window_bounds = array<i64: 1, 9, 9, 4>}, {transform_indices = @transform_3, window_bounds = array<i64: 1, 9, 9, 4>}, {transform_indices = @transform_4, window_bounds = array<i64: 3, 3, 4, 128>}, {transform_indices = @transform_5, window_bounds = array<i64: 1, 8, 8, 128>}]} {
    %cst = arith.constant 0.000000e+00 : f32
    %0 = vector.broadcast %cst : f32 to vector<8x128xf32>
    %c0 = arith.constant 0 : index
    %c0_0 = arith.constant 0 : index
    %c0_1 = arith.constant 0 : index
    %c0_2 = arith.constant 0 : index
    %1 = vector.load %arg2[%c0, %c0_0, %c0_1, %c0_2] : memref<1x9x9x4xbf16, #tpu.memory_space<vmem>>, vector<1x1x8x4xbf16>
    %2 = vector.shape_cast %1 : vector<1x1x8x4xbf16> to vector<8x4xbf16>
    %c0_3 = arith.constant 0 : index
    %c0_4 = arith.constant 0 : index
    %c0_5 = arith.constant 0 : index
    %c0_6 = arith.constant 0 : index
    %3 = vector.load %arg6[%c0_3, %c0_4, %c0_5, %c0_6] : memref<3x3x4x128xbf16, #tpu.memory_space<vmem>>, vector<1x1x4x128xbf16>
    %4 = vector.shape_cast %3 : vector<1x1x4x128xbf16> to vector<4x128xbf16>
    %cst_7 = arith.constant dense<0.000000e+00> : vector<8x128xf32>
    %5 = tpu.matmul %2, %4, %cst_7 {dimension_numbers = #tpu.dot_dimension_numbers<[1], [0], [0], [1], [0, 0, 1, 1], [], []>} : vector<8x4xbf16>, vector<4x128xbf16>, vector<8x128xf32> -> vector<8x128xf32>
    %6 = arith.addf %0, %5 : vector<8x128xf32>
    %c0_8 = arith.constant 0 : index
    %c0_9 = arith.constant 0 : index
    %c0_10 = arith.constant 0 : index
    %c0_11 = arith.constant 0 : index
    %7 = vector.load %arg3[%c0_8, %c0_9, %c0_10, %c0_11] : memref<1x9x9x4xbf16, #tpu.memory_space<vmem>>, vector<1x1x8x4xbf16>
    %8 = vector.shape_cast %7 : vector<1x1x8x4xbf16> to vector<8x4xbf16>
    %c0_12 = arith.constant 0 : index
    %c1 = arith.constant 1 : index
    %c0_13 = arith.constant 0 : index
    %c0_14 = arith.constant 0 : index
    %9 = vector.load %arg6[%c0_12, %c1, %c0_13, %c0_14] : memref<3x3x4x128xbf16, #tpu.memory_space<vmem>>, vector<1x1x4x128xbf16>
    %10 = vector.shape_cast %9 : vector<1x1x4x128xbf16> to vector<4x128xbf16>
    %cst_15 = arith.constant dense<0.000000e+00> : vector<8x128xf32>
    %11 = tpu.matmul %8, %10, %cst_15 {dimension_numbers = #tpu.dot_dimension_numbers<[1], [0], [0], [1], [0, 0, 1, 1], [], []>} : vector<8x4xbf16>, vector<4x128xbf16>, vector<8x128xf32> -> vector<8x128xf32>
    %12 = arith.addf %6, %11 : vector<8x128xf32>
    %c0_16 = arith.constant 0 : index
    %c0_17 = arith.constant 0 : index
    %c1_18 = arith.constant 1 : index
    %c0_19 = arith.constant 0 : index
    %13 = vector.load %arg2[%c0_16, %c0_17, %c1_18, %c0_19] : memref<1x9x9x4xbf16, #tpu.memory_space<vmem>>, vector<1x1x8x4xbf16>
    %14 = vector.shape_cast %13 : vector<1x1x8x4xbf16> to vector<8x4xbf16>
    %c0_20 = arith.constant 0 : index
    %c2 = arith.constant 2 : index
    %c0_21 = arith.constant 0 : index
    %c0_22 = arith.constant 0 : index
    %15 = vector.load %arg6[%c0_20, %c2, %c0_21, %c0_22] : memref<3x3x4x128xbf16, #tpu.memory_space<vmem>>, vector<1x1x4x128xbf16>
    %16 = vector.shape_cast %15 : vector<1x1x4x128xbf16> to vector<4x128xbf16>
    %cst_23 = arith.constant dense<0.000000e+00> : vector<8x128xf32>
    %17 = tpu.matmul %14, %16, %cst_23 {dimension_numbers = #tpu.dot_dimension_numbers<[1], [0], [0], [1], [0, 0, 1, 1], [], []>} : vector<8x4xbf16>, vector<4x128xbf16>, vector<8x128xf32> -> vector<8x128xf32>
    %18 = arith.addf %12, %17 : vector<8x128xf32>
    %c0_24 = arith.constant 0 : index
    %c0_25 = arith.constant 0 : index
    %c0_26 = arith.constant 0 : index
    %c0_27 = arith.constant 0 : index
    %19 = vector.load %arg4[%c0_24, %c0_25, %c0_26, %c0_27] : memref<1x9x9x4xbf16, #tpu.memory_space<vmem>>, vector<1x1x8x4xbf16>
    %20 = vector.shape_cast %19 : vector<1x1x8x4xbf16> to vector<8x4xbf16>
    %c1_28 = arith.constant 1 : index
    %c0_29 = arith.constant 0 : index
    %c0_30 = arith.constant 0 : index
    %c0_31 = arith.constant 0 : index
    %21 = vector.load %arg6[%c1_28, %c0_29, %c0_30, %c0_31] : memref<3x3x4x128xbf16, #tpu.memory_space<vmem>>, vector<1x1x4x128xbf16>
    %22 = vector.shape_cast %21 : vector<1x1x4x128xbf16> to vector<4x128xbf16>
    %cst_32 = arith.constant dense<0.000000e+00> : vector<8x128xf32>
    %23 = tpu.matmul %20, %22, %cst_32 {dimension_numbers = #tpu.dot_dimension_numbers<[1], [0], [0], [1], [0, 0, 1, 1], [], []>} : vector<8x4xbf16>, vector<4x128xbf16>, vector<8x128xf32> -> vector<8x128xf32>
    %24 = arith.addf %18, %23 : vector<8x128xf32>
    %c0_33 = arith.constant 0 : index
    %c0_34 = arith.constant 0 : index
    %c0_35 = arith.constant 0 : index
    %c0_36 = arith.constant 0 : index
    %25 = vector.load %arg5[%c0_33, %c0_34, %c0_35, %c0_36] : memref<1x9x9x4xbf16, #tpu.memory_space<vmem>>, vector<1x1x8x4xbf16>
    %26 = vector.shape_cast %25 : vector<1x1x8x4xbf16> to vector<8x4xbf16>
    %c1_37 = arith.constant 1 : index
    %c1_38 = arith.constant 1 : index
    %c0_39 = arith.constant 0 : index
    %c0_40 = arith.constant 0 : index
    %27 = vector.load %arg6[%c1_37, %c1_38, %c0_39, %c0_40] : memref<3x3x4x128xbf16, #tpu.memory_space<vmem>>, vector<1x1x4x128xbf16>
    %28 = vector.shape_cast %27 : vector<1x1x4x128xbf16> to vector<4x128xbf16>
    %cst_41 = arith.constant dense<0.000000e+00> : vector<8x128xf32>
    %29 = tpu.matmul %26, %28, %cst_41 {dimension_numbers = #tpu.dot_dimension_numbers<[1], [0], [0], [1], [0, 0, 1, 1], [], []>} : vector<8x4xbf16>, vector<4x128xbf16>, vector<8x128xf32> -> vector<8x128xf32>
    %30 = arith.addf %24, %29 : vector<8x128xf32>
    %c0_42 = arith.constant 0 : index
    %c0_43 = arith.constant 0 : index
    %c1_44 = arith.constant 1 : index
    %c0_45 = arith.constant 0 : index
    %31 = vector.load %arg4[%c0_42, %c0_43, %c1_44, %c0_45] : memref<1x9x9x4xbf16, #tpu.memory_space<vmem>>, vector<1x1x8x4xbf16>
    %32 = vector.shape_cast %31 : vector<1x1x8x4xbf16> to vector<8x4xbf16>
    %c1_46 = arith.constant 1 : index
    %c2_47 = arith.constant 2 : index
    %c0_48 = arith.constant 0 : index
    %c0_49 = arith.constant 0 : index
    %33 = vector.load %arg6[%c1_46, %c2_47, %c0_48, %c0_49] : memref<3x3x4x128xbf16, #tpu.memory_space<vmem>>, vector<1x1x4x128xbf16>
    %34 = vector.shape_cast %33 : vector<1x1x4x128xbf16> to vector<4x128xbf16>
    %cst_50 = arith.constant dense<0.000000e+00> : vector<8x128xf32>
    %35 = tpu.matmul %32, %34, %cst_50 {dimension_numbers = #tpu.dot_dimension_numbers<[1], [0], [0], [1], [0, 0, 1, 1], [], []>} : vector<8x4xbf16>, vector<4x128xbf16>, vector<8x128xf32> -> vector<8x128xf32>
    %36 = arith.addf %30, %35 : vector<8x128xf32>
    %c0_51 = arith.constant 0 : index
    %c1_52 = arith.constant 1 : index
    %c0_53 = arith.constant 0 : index
    %c0_54 = arith.constant 0 : index
    %37 = vector.load %arg2[%c0_51, %c1_52, %c0_53, %c0_54] : memref<1x9x9x4xbf16, #tpu.memory_space<vmem>>, vector<1x1x8x4xbf16>
    %38 = vector.shape_cast %37 : vector<1x1x8x4xbf16> to vector<8x4xbf16>
    %c2_55 = arith.constant 2 : index
    %c0_56 = arith.constant 0 : index
    %c0_57 = arith.constant 0 : index
    %c0_58 = arith.constant 0 : index
    %39 = vector.load %arg6[%c2_55, %c0_56, %c0_57, %c0_58] : memref<3x3x4x128xbf16, #tpu.memory_space<vmem>>, vector<1x1x4x128xbf16>
    %40 = vector.shape_cast %39 : vector<1x1x4x128xbf16> to vector<4x128xbf16>
    %cst_59 = arith.constant dense<0.000000e+00> : vector<8x128xf32>
    %41 = tpu.matmul %38, %40, %cst_59 {dimension_numbers = #tpu.dot_dimension_numbers<[1], [0], [0], [1], [0, 0, 1, 1], [], []>} : vector<8x4xbf16>, vector<4x128xbf16>, vector<8x128xf32> -> vector<8x128xf32>
    %42 = arith.addf %36, %41 : vector<8x128xf32>
    %c0_60 = arith.constant 0 : index
    %c1_61 = arith.constant 1 : index
    %c0_62 = arith.constant 0 : index
    %c0_63 = arith.constant 0 : index
    %43 = vector.load %arg3[%c0_60, %c1_61, %c0_62, %c0_63] : memref<1x9x9x4xbf16, #tpu.memory_space<vmem>>, vector<1x1x8x4xbf16>
    %44 = vector.shape_cast %43 : vector<1x1x8x4xbf16> to vector<8x4xbf16>
    %c2_64 = arith.constant 2 : index
    %c1_65 = arith.constant 1 : index
    %c0_66 = arith.constant 0 : index
    %c0_67 = arith.constant 0 : index
    %45 = vector.load %arg6[%c2_64, %c1_65, %c0_66, %c0_67] : memref<3x3x4x128xbf16, #tpu.memory_space<vmem>>, vector<1x1x4x128xbf16>
    %46 = vector.shape_cast %45 : vector<1x1x4x128xbf16> to vector<4x128xbf16>
    %cst_68 = arith.constant dense<0.000000e+00> : vector<8x128xf32>
    %47 = tpu.matmul %44, %46, %cst_68 {dimension_numbers = #tpu.dot_dimension_numbers<[1], [0], [0], [1], [0, 0, 1, 1], [], []>} : vector<8x4xbf16>, vector<4x128xbf16>, vector<8x128xf32> -> vector<8x128xf32>
    %48 = arith.addf %42, %47 : vector<8x128xf32>
    %c0_69 = arith.constant 0 : index
    %c1_70 = arith.constant 1 : index
    %c1_71 = arith.constant 1 : index
    %c0_72 = arith.constant 0 : index
    %49 = vector.load %arg2[%c0_69, %c1_70, %c1_71, %c0_72] : memref<1x9x9x4xbf16, #tpu.memory_space<vmem>>, vector<1x1x8x4xbf16>
    %50 = vector.shape_cast %49 : vector<1x1x8x4xbf16> to vector<8x4xbf16>
    %c2_73 = arith.constant 2 : index
    %c2_74 = arith.constant 2 : index
    %c0_75 = arith.constant 0 : index
    %c0_76 = arith.constant 0 : index
    %51 = vector.load %arg6[%c2_73, %c2_74, %c0_75, %c0_76] : memref<3x3x4x128xbf16, #tpu.memory_space<vmem>>, vector<1x1x4x128xbf16>
    %52 = vector.shape_cast %51 : vector<1x1x4x128xbf16> to vector<4x128xbf16>
    %cst_77 = arith.constant dense<0.000000e+00> : vector<8x128xf32>
    %53 = tpu.matmul %50, %52, %cst_77 {dimension_numbers = #tpu.dot_dimension_numbers<[1], [0], [0], [1], [0, 0, 1, 1], [], []>} : vector<8x4xbf16>, vector<4x128xbf16>, vector<8x128xf32> -> vector<8x128xf32>
    %54 = arith.addf %48, %53 : vector<8x128xf32>
    %c0_78 = arith.constant 0 : index
    %c0_79 = arith.constant 0 : index
    %c0_80 = arith.constant 0 : index
    %c0_81 = arith.constant 0 : index
    %55 = vector.load %arg7[%c0_78, %c0_79, %c0_80, %c0_81] : memref<1x8x8x128xf32, #tpu.memory_space<vmem>>, vector<1x1x8x128xf32>
    %56 = vector.shape_cast %55 : vector<1x1x8x128xf32> to vector<8x128xf32>
    %57 = vector.shape_cast %54 : vector<8x128xf32> to vector<1x1x8x128xf32>
    tpu.vector_store %arg7[%c0_78, %c0_79, %c0_80, %c0_81], %57 {strides = array<i32>} : memref<1x8x8x128xf32, #tpu.memory_space<vmem>>, vector<1x1x8x128xf32>,
    %cst_82 = arith.constant 0.000000e+00 : f32
    %58 = vector.broadcast %cst_82 : f32 to vector<8x128xf32>
    %c0_83 = arith.constant 0 : index
    %c1_84 = arith.constant 1 : index
    %c0_85 = arith.constant 0 : index
    %c0_86 = arith.constant 0 : index
    %59 = vector.load %arg2[%c0_83, %c1_84, %c0_85, %c0_86] : memref<1x9x9x4xbf16, #tpu.memory_space<vmem>>, vector<1x1x8x4xbf16>
    %60 = vector.shape_cast %59 : vector<1x1x8x4xbf16> to vector<8x4xbf16>
    %c0_87 = arith.constant 0 : index
    %c0_88 = arith.constant 0 : index
    %c0_89 = arith.constant 0 : index
    %c0_90 = arith.constant 0 : index
    %61 = vector.load %arg6[%c0_87, %c0_88, %c0_89, %c0_90] : memref<3x3x4x128xbf16, #tpu.memory_space<vmem>>, vector<1x1x4x128xbf16>
    %62 = vector.shape_cast %61 : vector<1x1x4x128xbf16> to vector<4x128xbf16>
    %cst_91 = arith.constant dense<0.000000e+00> : vector<8x128xf32>
    %63 = tpu.matmul %60, %62, %cst_91 {dimension_numbers = #tpu.dot_dimension_numbers<[1], [0], [0], [1], [0, 0, 1, 1], [], []>} : vector<8x4xbf16>, vector<4x128xbf16>, vector<8x128xf32> -> vector<8x128xf32>
    %64 = arith.addf %58, %63 : vector<8x128xf32>
    %c0_92 = arith.constant 0 : index
    %c1_93 = arith.constant 1 : index
    %c0_94 = arith.constant 0 : index
    %c0_95 = arith.constant 0 : index
    %65 = vector.load %arg3[%c0_92, %c1_93, %c0_94, %c0_95] : memref<1x9x9x4xbf16, #tpu.memory_space<vmem>>, vector<1x1x8x4xbf16>
    %66 = vector.shape_cast %65 : vector<1x1x8x4xbf16> to vector<8x4xbf16>
    %c0_96 = arith.constant 0 : index
    %c1_97 = arith.constant 1 : index
    %c0_98 = arith.constant 0 : index
    %c0_99 = arith.constant 0 : index
    %67 = vector.load %arg6[%c0_96, %c1_97, %c0_98, %c0_99] : memref<3x3x4x128xbf16, #tpu.memory_space<vmem>>, vector<1x1x4x128xbf16>
    %68 = vector.shape_cast %67 : vector<1x1x4x128xbf16> to vector<4x128xbf16>
    %cst_100 = arith.constant dense<0.000000e+00> : vector<8x128xf32>
    %69 = tpu.matmul %66, %68, %cst_100 {dimension_numbers = #tpu.dot_dimension_numbers<[1], [0], [0], [1], [0, 0, 1, 1], [], []>} : vector<8x4xbf16>, vector<4x128xbf16>, vector<8x128xf32> -> vector<8x128xf32>
    %70 = arith.addf %64, %69 : vector<8x128xf32>
    %c0_101 = arith.constant 0 : index
    %c1_102 = arith.constant 1 : index
    %c1_103 = arith.constant 1 : index
    %c0_104 = arith.constant 0 : index
    %71 = vector.load %arg2[%c0_101, %c1_102, %c1_103, %c0_104] : memref<1x9x9x4xbf16, #tpu.memory_space<vmem>>, vector<1x1x8x4xbf16>
    %72 = vector.shape_cast %71 : vector<1x1x8x4xbf16> to vector<8x4xbf16>
    %c0_105 = arith.constant 0 : index
    %c2_106 = arith.constant 2 : index
    %c0_107 = arith.constant 0 : index
    %c0_108 = arith.constant 0 : index
    %73 = vector.load %arg6[%c0_105, %c2_106, %c0_107, %c0_108] : memref<3x3x4x128xbf16, #tpu.memory_space<vmem>>, vector<1x1x4x128xbf16>
    %74 = vector.shape_cast %73 : vector<1x1x4x128xbf16> to vector<4x128xbf16>
    %cst_109 = arith.constant dense<0.000000e+00> : vector<8x128xf32>
    %75 = tpu.matmul %72, %74, %cst_109 {dimension_numbers = #tpu.dot_dimension_numbers<[1], [0], [0], [1], [0, 0, 1, 1], [], []>} : vector<8x4xbf16>, vector<4x128xbf16>, vector<8x128xf32> -> vector<8x128xf32>
    %76 = arith.addf %70, %75 : vector<8x128xf32>
    %c0_110 = arith.constant 0 : index
    %c1_111 = arith.constant 1 : index
    %c0_112 = arith.constant 0 : index
    %c0_113 = arith.constant 0 : index
    %77 = vector.load %arg4[%c0_110, %c1_111, %c0_112, %c0_113] : memref<1x9x9x4xbf16, #tpu.memory_space<vmem>>, vector<1x1x8x4xbf16>
    %78 = vector.shape_cast %77 : vector<1x1x8x4xbf16> to vector<8x4xbf16>
    %c1_114 = arith.constant 1 : index
    %c0_115 = arith.constant 0 : index
    %c0_116 = arith.constant 0 : index
    %c0_117 = arith.constant 0 : index
    %79 = vector.load %arg6[%c1_114, %c0_115, %c0_116, %c0_117] : memref<3x3x4x128xbf16, #tpu.memory_space<vmem>>, vector<1x1x4x128xbf16>
    %80 = vector.shape_cast %79 : vector<1x1x4x128xbf16> to vector<4x128xbf16>
    %cst_118 = arith.constant dense<0.000000e+00> : vector<8x128xf32>
    %81 = tpu.matmul %78, %80, %cst_118 {dimension_numbers = #tpu.dot_dimension_numbers<[1], [0], [0], [1], [0, 0, 1, 1], [], []>} : vector<8x4xbf16>, vector<4x128xbf16>, vector<8x128xf32> -> vector<8x128xf32>
    %82 = arith.addf %76, %81 : vector<8x128xf32>
    %c0_119 = arith.constant 0 : index
    %c1_120 = arith.constant 1 : index
    %c0_121 = arith.constant 0 : index
    %c0_122 = arith.constant 0 : index
    %83 = vector.load %arg5[%c0_119, %c1_120, %c0_121, %c0_122] : memref<1x9x9x4xbf16, #tpu.memory_space<vmem>>, vector<1x1x8x4xbf16>
    %84 = vector.shape_cast %83 : vector<1x1x8x4xbf16> to vector<8x4xbf16>
    %c1_123 = arith.constant 1 : index
    %c1_124 = arith.constant 1 : index
    %c0_125 = arith.constant 0 : index
    %c0_126 = arith.constant 0 : index
    %85 = vector.load %arg6[%c1_123, %c1_124, %c0_125, %c0_126] : memref<3x3x4x128xbf16, #tpu.memory_space<vmem>>, vector<1x1x4x128xbf16>
    %86 = vector.shape_cast %85 : vector<1x1x4x128xbf16> to vector<4x128xbf16>
    %cst_127 = arith.constant dense<0.000000e+00> : vector<8x128xf32>
    %87 = tpu.matmul %84, %86, %cst_127 {dimension_numbers = #tpu.dot_dimension_numbers<[1], [0], [0], [1], [0, 0, 1, 1], [], []>} : vector<8x4xbf16>, vector<4x128xbf16>, vector<8x128xf32> -> vector<8x128xf32>
    %88 = arith.addf %82, %87 : vector<8x128xf32>
    %c0_128 = arith.constant 0 : index
    %c1_129 = arith.constant 1 : index
    %c1_130 = arith.constant 1 : index
    %c0_131 = arith.constant 0 : index
    %89 = vector.load %arg4[%c0_128, %c1_129, %c1_130, %c0_131] : memref<1x9x9x4xbf16, #tpu.memory_space<vmem>>, vector<1x1x8x4xbf16>
    %90 = vector.shape_cast %89 : vector<1x1x8x4xbf16> to vector<8x4xbf16>
    %c1_132 = arith.constant 1 : index
    %c2_133 = arith.constant 2 : index
    %c0_134 = arith.constant 0 : index
    %c0_135 = arith.constant 0 : index
    %91 = vector.load %arg6[%c1_132, %c2_133, %c0_134, %c0_135] : memref<3x3x4x128xbf16, #tpu.memory_space<vmem>>, vector<1x1x4x128xbf16>
    %92 = vector.shape_cast %91 : vector<1x1x4x128xbf16> to vector<4x128xbf16>
    %cst_136 = arith.constant dense<0.000000e+00> : vector<8x128xf32>
    %93 = tpu.matmul %90, %92, %cst_136 {dimension_numbers = #tpu.dot_dimension_numbers<[1], [0], [0], [1], [0, 0, 1, 1], [], []>} : vector<8x4xbf16>, vector<4x128xbf16>, vector<8x128xf32> -> vector<8x128xf32>
    %94 = arith.addf %88, %93 : vector<8x128xf32>
    %c0_137 = arith.constant 0 : index
    %c2_138 = arith.constant 2 : index
    %c0_139 = arith.constant 0 : index
    %c0_140 = arith.constant 0 : index
    %95 = vector.load %arg2[%c0_137, %c2_138, %c0_139, %c0_140] : memref<1x9x9x4xbf16, #tpu.memory_space<vmem>>, vector<1x1x8x4xbf16>
    %96 = vector.shape_cast %95 : vector<1x1x8x4xbf16> to vector<8x4xbf16>
    %c2_141 = arith.constant 2 : index
    %c0_142 = arith.constant 0 : index
    %c0_143 = arith.constant 0 : index
    %c0_144 = arith.constant 0 : index
    %97 = vector.load %arg6[%c2_141, %c0_142, %c0_143, %c0_144] : memref<3x3x4x128xbf16, #tpu.memory_space<vmem>>, vector<1x1x4x128xbf16>
    %98 = vector.shape_cast %97 : vector<1x1x4x128xbf16> to vector<4x128xbf16>
    %cst_145 = arith.constant dense<0.000000e+00> : vector<8x128xf32>
    %99 = tpu.matmul %96, %98, %cst_145 {dimension_numbers = #tpu.dot_dimension_numbers<[1], [0], [0], [1], [0, 0, 1, 1], [], []>} : vector<8x4xbf16>, vector<4x128xbf16>, vector<8x128xf32> -> vector<8x128xf32>
    %100 = arith.addf %94, %99 : vector<8x128xf32>
    %c0_146 = arith.constant 0 : index
    %c2_147 = arith.constant 2 : index
    %c0_148 = arith.constant 0 : index
    %c0_149 = arith.constant 0 : index
    %101 = vector.load %arg3[%c0_146, %c2_147, %c0_148, %c0_149] : memref<1x9x9x4xbf16, #tpu.memory_space<vmem>>, vector<1x1x8x4xbf16>
    %102 = vector.shape_cast %101 : vector<1x1x8x4xbf16> to vector<8x4xbf16>
    %c2_150 = arith.constant 2 : index
    %c1_151 = arith.constant 1 : index
    %c0_152 = arith.constant 0 : index
    %c0_153 = arith.constant 0 : index
    %103 = vector.load %arg6[%c2_150, %c1_151, %c0_152, %c0_153] : memref<3x3x4x128xbf16, #tpu.memory_space<vmem>>, vector<1x1x4x128xbf16>
    %104 = vector.shape_cast %103 : vector<1x1x4x128xbf16> to vector<4x128xbf16>
    %cst_154 = arith.constant dense<0.000000e+00> : vector<8x128xf32>
    %105 = tpu.matmul %102, %104, %cst_154 {dimension_numbers = #tpu.dot_dimension_numbers<[1], [0], [0], [1], [0, 0, 1, 1], [], []>} : vector<8x4xbf16>, vector<4x128xbf16>, vector<8x128xf32> -> vector<8x128xf32>
    %106 = arith.addf %100, %105 : vector<8x128xf32>
    %c0_155 = arith.constant 0 : index
    %c2_156 = arith.constant 2 : index
    %c1_157 = arith.constant 1 : index
    %c0_158 = arith.constant 0 : index
    %107 = vector.load %arg2[%c0_155, %c2_156, %c1_157, %c0_158] : memref<1x9x9x4xbf16, #tpu.memory_space<vmem>>, vector<1x1x8x4xbf16>
    %108 = vector.shape_cast %107 : vector<1x1x8x4xbf16> to vector<8x4xbf16>
    %c2_159 = arith.constant 2 : index
    %c2_160 = arith.constant 2 : index
    %c0_161 = arith.constant 0 : index
    %c0_162 = arith.constant 0 : index
    %109 = vector.load %arg6[%c2_159, %c2_160, %c0_161, %c0_162] : memref<3x3x4x128xbf16, #tpu.memory_space<vmem>>, vector<1x1x4x128xbf16>
    %110 = vector.shape_cast %109 : vector<1x1x4x128xbf16> to vector<4x128xbf16>
    %cst_163 = arith.constant dense<0.000000e+00> : vector<8x128xf32>
    %111 = tpu.matmul %108, %110, %cst_163 {dimension_numbers = #tpu.dot_dimension_numbers<[1], [0], [0], [1], [0, 0, 1, 1], [], []>} : vector<8x4xbf16>, vector<4x128xbf16>, vector<8x128xf32> -> vector<8x128xf32>
    %112 = arith.addf %106, %111 : vector<8x128xf32>
    %c0_164 = arith.constant 0 : index
    %c1_165 = arith.constant 1 : index
    %c0_166 = arith.constant 0 : index
    %c0_167 = arith.constant 0 : index
    %113 = vector.load %arg7[%c0_164, %c1_165, %c0_166, %c0_167] : memref<1x8x8x128xf32, #tpu.memory_space<vmem>>, vector<1x1x8x128xf32>
    %114 = vector.shape_cast %113 : vector<1x1x8x128xf32> to vector<8x128xf32>
    %115 = vector.shape_cast %112 : vector<8x128xf32> to vector<1x1x8x128xf32>
    tpu.vector_store %arg7[%c0_164, %c1_165, %c0_166, %c0_167], %115 {strides = array<i32>} : memref<1x8x8x128xf32, #tpu.memory_space<vmem>>, vector<1x1x8x128xf32>,
    %cst_168 = arith.constant 0.000000e+00 : f32
    %116 = vector.broadcast %cst_168 : f32 to vector<8x128xf32>
    %c0_169 = arith.constant 0 : index
    %c2_170 = arith.constant 2 : index
    %c0_171 = arith.constant 0 : index
    %c0_172 = arith.constant 0 : index
    %117 = vector.load %arg2[%c0_169, %c2_170, %c0_171, %c0_172] : memref<1x9x9x4xbf16, #tpu.memory_space<vmem>>, vector<1x1x8x4xbf16>
    %118 = vector.shape_cast %117 : vector<1x1x8x4xbf16> to vector<8x4xbf16>
    %c0_173 = arith.constant 0 : index
    %c0_174 = arith.constant 0 : index
    %c0_175 = arith.constant 0 : index
    %c0_176 = arith.constant 0 : index
    %119 = vector.load %arg6[%c0_173, %c0_174, %c0_175, %c0_176] : memref<3x3x4x128xbf16, #tpu.memory_space<vmem>>, vector<1x1x4x128xbf16>
    %120 = vector.shape_cast %119 : vector<1x1x4x128xbf16> to vector<4x128xbf16>
    %cst_177 = arith.constant dense<0.000000e+00> : vector<8x128xf32>
    %121 = tpu.matmul %118, %120, %cst_177 {dimension_numbers = #tpu.dot_dimension_numbers<[1], [0], [0], [1], [0, 0, 1, 1], [], []>} : vector<8x4xbf16>, vector<4x128xbf16>, vector<8x128xf32> -> vector<8x128xf32>
    %122 = arith.addf %116, %121 : vector<8x128xf32>
    %c0_178 = arith.constant 0 : index
    %c2_179 = arith.constant 2 : index
    %c0_180 = arith.constant 0 : index
    %c0_181 = arith.constant 0 : index
    %123 = vector.load %arg3[%c0_178, %c2_179, %c0_180, %c0_181] : memref<1x9x9x4xbf16, #tpu.memory_space<vmem>>, vector<1x1x8x4xbf16>
    %124 = vector.shape_cast %123 : vector<1x1x8x4xbf16> to vector<8x4xbf16>
    %c0_182 = arith.constant 0 : index
    %c1_183 = arith.constant 1 : index
    %c0_184 = arith.constant 0 : index
    %c0_185 = arith.constant 0 : index
    %125 = vector.load %arg6[%c0_182, %c1_183, %c0_184, %c0_185] : memref<3x3x4x128xbf16, #tpu.memory_space<vmem>>, vector<1x1x4x128xbf16>
    %126 = vector.shape_cast %125 : vector<1x1x4x128xbf16> to vector<4x128xbf16>
    %cst_186 = arith.constant dense<0.000000e+00> : vector<8x128xf32>
    %127 = tpu.matmul %124, %126, %cst_186 {dimension_numbers = #tpu.dot_dimension_numbers<[1], [0], [0], [1], [0, 0, 1, 1], [], []>} : vector<8x4xbf16>, vector<4x128xbf16>, vector<8x128xf32> -> vector<8x128xf32>
    %128 = arith.addf %122, %127 : vector<8x128xf32>
    %c0_187 = arith.constant 0 : index
    %c2_188 = arith.constant 2 : index
    %c1_189 = arith.constant 1 : index
    %c0_190 = arith.constant 0 : index
    %129 = vector.load %arg2[%c0_187, %c2_188, %c1_189, %c0_190] : memref<1x9x9x4xbf16, #tpu.memory_space<vmem>>, vector<1x1x8x4xbf16>
    %130 = vector.shape_cast %129 : vector<1x1x8x4xbf16> to vector<8x4xbf16>
    %c0_191 = arith.constant 0 : index
    %c2_192 = arith.constant 2 : index
    %c0_193 = arith.constant 0 : index
    %c0_194 = arith.constant 0 : index
    %131 = vector.load %arg6[%c0_191, %c2_192, %c0_193, %c0_194] : memref<3x3x4x128xbf16, #tpu.memory_space<vmem>>, vector<1x1x4x128xbf16>
    %132 = vector.shape_cast %131 : vector<1x1x4x128xbf16> to vector<4x128xbf16>
    %cst_195 = arith.constant dense<0.000000e+00> : vector<8x128xf32>
    %133 = tpu.matmul %130, %132, %cst_195 {dimension_numbers = #tpu.dot_dimension_numbers<[1], [0], [0], [1], [0, 0, 1, 1], [], []>} : vector<8x4xbf16>, vector<4x128xbf16>, vector<8x128xf32> -> vector<8x128xf32>
    %134 = arith.addf %128, %133 : vector<8x128xf32>
    %c0_196 = arith.constant 0 : index
    %c2_197 = arith.constant 2 : index
    %c0_198 = arith.constant 0 : index
    %c0_199 = arith.constant 0 : index
    %135 = vector.load %arg4[%c0_196, %c2_197, %c0_198, %c0_199] : memref<1x9x9x4xbf16, #tpu.memory_space<vmem>>, vector<1x1x8x4xbf16>
    %136 = vector.shape_cast %135 : vector<1x1x8x4xbf16> to vector<8x4xbf16>
    %c1_200 = arith.constant 1 : index
    %c0_201 = arith.constant 0 : index
    %c0_202 = arith.constant 0 : index
    %c0_203 = arith.constant 0 : index
    %137 = vector.load %arg6[%c1_200, %c0_201, %c0_202, %c0_203] : memref<3x3x4x128xbf16, #tpu.memory_space<vmem>>, vector<1x1x4x128xbf16>
    %138 = vector.shape_cast %137 : vector<1x1x4x128xbf16> to vector<4x128xbf16>
    %cst_204 = arith.constant dense<0.000000e+00> : vector<8x128xf32>
    %139 = tpu.matmul %136, %138, %cst_204 {dimension_numbers = #tpu.dot_dimension_numbers<[1], [0], [0], [1], [0, 0, 1, 1], [], []>} : vector<8x4xbf16>, vector<4x128xbf16>, vector<8x128xf32> -> vector<8x128xf32>
    %140 = arith.addf %134, %139 : vector<8x128xf32>
    %c0_205 = arith.constant 0 : index
    %c2_206 = arith.constant 2 : index
    %c0_207 = arith.constant 0 : index
    %c0_208 = arith.constant 0 : index
    %141 = vector.load %arg5[%c0_205, %c2_206, %c0_207, %c0_208] : memref<1x9x9x4xbf16, #tpu.memory_space<vmem>>, vector<1x1x8x4xbf16>
    %142 = vector.shape_cast %141 : vector<1x1x8x4xbf16> to vector<8x4xbf16>
    %c1_209 = arith.constant 1 : index
    %c1_210 = arith.constant 1 : index
    %c0_211 = arith.constant 0 : index
    %c0_212 = arith.constant 0 : index
    %143 = vector.load %arg6[%c1_209, %c1_210, %c0_211, %c0_212] : memref<3x3x4x128xbf16, #tpu.memory_space<vmem>>, vector<1x1x4x128xbf16>
    %144 = vector.shape_cast %143 : vector<1x1x4x128xbf16> to vector<4x128xbf16>
    %cst_213 = arith.constant dense<0.000000e+00> : vector<8x128xf32>
    %145 = tpu.matmul %142, %144, %cst_213 {dimension_numbers = #tpu.dot_dimension_numbers<[1], [0], [0], [1], [0, 0, 1, 1], [], []>} : vector<8x4xbf16>, vector<4x128xbf16>, vector<8x128xf32> -> vector<8x128xf32>
    %146 = arith.addf %140, %145 : vector<8x128xf32>
    %c0_214 = arith.constant 0 : index
    %c2_215 = arith.constant 2 : index
    %c1_216 = arith.constant 1 : index
    %c0_217 = arith.constant 0 : index
    %147 = vector.load %arg4[%c0_214, %c2_215, %c1_216, %c0_217] : memref<1x9x9x4xbf16, #tpu.memory_space<vmem>>, vector<1x1x8x4xbf16>
    %148 = vector.shape_cast %147 : vector<1x1x8x4xbf16> to vector<8x4xbf16>
    %c1_218 = arith.constant 1 : index
    %c2_219 = arith.constant 2 : index
    %c0_220 = arith.constant 0 : index
    %c0_221 = arith.constant 0 : index
    %149 = vector.load %arg6[%c1_218, %c2_219, %c0_220, %c0_221] : memref<3x3x4x128xbf16, #tpu.memory_space<vmem>>, vector<1x1x4x128xbf16>
    %150 = vector.shape_cast %149 : vector<1x1x4x128xbf16> to vector<4x128xbf16>
    %cst_222 = arith.constant dense<0.000000e+00> : vector<8x128xf32>
    %151 = tpu.matmul %148, %150, %cst_222 {dimension_numbers = #tpu.dot_dimension_numbers<[1], [0], [0], [1], [0, 0, 1, 1], [], []>} : vector<8x4xbf16>, vector<4x128xbf16>, vector<8x128xf32> -> vector<8x128xf32>
    %152 = arith.addf %146, %151 : vector<8x128xf32>
    %c0_223 = arith.constant 0 : index
    %c3 = arith.constant 3 : index
    %c0_224 = arith.constant 0 : index
    %c0_225 = arith.constant 0 : index
    %153 = vector.load %arg2[%c0_223, %c3, %c0_224, %c0_225] : memref<1x9x9x4xbf16, #tpu.memory_space<vmem>>, vector<1x1x8x4xbf16>
    %154 = vector.shape_cast %153 : vector<1x1x8x4xbf16> to vector<8x4xbf16>
    %c2_226 = arith.constant 2 : index
    %c0_227 = arith.constant 0 : index
    %c0_228 = arith.constant 0 : index
    %c0_229 = arith.constant 0 : index
    %155 = vector.load %arg6[%c2_226, %c0_227, %c0_228, %c0_229] : memref<3x3x4x128xbf16, #tpu.memory_space<vmem>>, vector<1x1x4x128xbf16>
    %156 = vector.shape_cast %155 : vector<1x1x4x128xbf16> to vector<4x128xbf16>
    %cst_230 = arith.constant dense<0.000000e+00> : vector<8x128xf32>
    %157 = tpu.matmul %154, %156, %cst_230 {dimension_numbers = #tpu.dot_dimension_numbers<[1], [0], [0], [1], [0, 0, 1, 1], [], []>} : vector<8x4xbf16>, vector<4x128xbf16>, vector<8x128xf32> -> vector<8x128xf32>
    %158 = arith.addf %152, %157 : vector<8x128xf32>
    %c0_231 = arith.constant 0 : index
    %c3_232 = arith.constant 3 : index
    %c0_233 = arith.constant 0 : index
    %c0_234 = arith.constant 0 : index
    %159 = vector.load %arg3[%c0_231, %c3_232, %c0_233, %c0_234] : memref<1x9x9x4xbf16, #tpu.memory_space<vmem>>, vector<1x1x8x4xbf16>
    %160 = vector.shape_cast %159 : vector<1x1x8x4xbf16> to vector<8x4xbf16>
    %c2_235 = arith.constant 2 : index
    %c1_236 = arith.constant 1 : index
    %c0_237 = arith.constant 0 : index
    %c0_238 = arith.constant 0 : index
    %161 = vector.load %arg6[%c2_235, %c1_236, %c0_237, %c0_238] : memref<3x3x4x128xbf16, #tpu.memory_space<vmem>>, vector<1x1x4x128xbf16>
    %162 = vector.shape_cast %161 : vector<1x1x4x128xbf16> to vector<4x128xbf16>
    %cst_239 = arith.constant dense<0.000000e+00> : vector<8x128xf32>
    %163 = tpu.matmul %160, %162, %cst_239 {dimension_numbers = #tpu.dot_dimension_numbers<[1], [0], [0], [1], [0, 0, 1, 1], [], []>} : vector<8x4xbf16>, vector<4x128xbf16>, vector<8x128xf32> -> vector<8x128xf32>
    %164 = arith.addf %158, %163 : vector<8x128xf32>
    %c0_240 = arith.constant 0 : index
    %c3_241 = arith.constant 3 : index
    %c1_242 = arith.constant 1 : index
    %c0_243 = arith.constant 0 : index
    %165 = vector.load %arg2[%c0_240, %c3_241, %c1_242, %c0_243] : memref<1x9x9x4xbf16, #tpu.memory_space<vmem>>, vector<1x1x8x4xbf16>
    %166 = vector.shape_cast %165 : vector<1x1x8x4xbf16> to vector<8x4xbf16>
    %c2_244 = arith.constant 2 : index
    %c2_245 = arith.constant 2 : index
    %c0_246 = arith.constant 0 : index
    %c0_247 = arith.constant 0 : index
    %167 = vector.load %arg6[%c2_244, %c2_245, %c0_246, %c0_247] : memref<3x3x4x128xbf16, #tpu.memory_space<vmem>>, vector<1x1x4x128xbf16>
    %168 = vector.shape_cast %167 : vector<1x1x4x128xbf16> to vector<4x128xbf16>
    %cst_248 = arith.constant dense<0.000000e+00> : vector<8x128xf32>
    %169 = tpu.matmul %166, %168, %cst_248 {dimension_numbers = #tpu.dot_dimension_numbers<[1], [0], [0], [1], [0, 0, 1, 1], [], []>} : vector<8x4xbf16>, vector<4x128xbf16>, vector<8x128xf32> -> vector<8x128xf32>
    %170 = arith.addf %164, %169 : vector<8x128xf32>
    %c0_249 = arith.constant 0 : index
    %c2_250 = arith.constant 2 : index
    %c0_251 = arith.constant 0 : index
    %c0_252 = arith.constant 0 : index
    %171 = vector.load %arg7[%c0_249, %c2_250, %c0_251, %c0_252] : memref<1x8x8x128xf32, #tpu.memory_space<vmem>>, vector<1x1x8x128xf32>
    %172 = vector.shape_cast %171 : vector<1x1x8x128xf32> to vector<8x128xf32>
    %173 = vector.shape_cast %170 : vector<8x128xf32> to vector<1x1x8x128xf32>
    tpu.vector_store %arg7[%c0_249, %c2_250, %c0_251, %c0_252], %173 {strides = array<i32>} : memref<1x8x8x128xf32, #tpu.memory_space<vmem>>, vector<1x1x8x128xf32>,
    %cst_253 = arith.constant 0.000000e+00 : f32
    %174 = vector.broadcast %cst_253 : f32 to vector<8x128xf32>
    %c0_254 = arith.constant 0 : index
    %c3_255 = arith.constant 3 : index
    %c0_256 = arith.constant 0 : index
    %c0_257 = arith.constant 0 : index
    %175 = vector.load %arg2[%c0_254, %c3_255, %c0_256, %c0_257] : memref<1x9x9x4xbf16, #tpu.memory_space<vmem>>, vector<1x1x8x4xbf16>
    %176 = vector.shape_cast %175 : vector<1x1x8x4xbf16> to vector<8x4xbf16>
    %c0_258 = arith.constant 0 : index
    %c0_259 = arith.constant 0 : index
    %c0_260 = arith.constant 0 : index
    %c0_261 = arith.constant 0 : index
    %177 = vector.load %arg6[%c0_258, %c0_259, %c0_260, %c0_261] : memref<3x3x4x128xbf16, #tpu.memory_space<vmem>>, vector<1x1x4x128xbf16>
    %178 = vector.shape_cast %177 : vector<1x1x4x128xbf16> to vector<4x128xbf16>
    %cst_262 = arith.constant dense<0.000000e+00> : vector<8x128xf32>
    %179 = tpu.matmul %176, %178, %cst_262 {dimension_numbers = #tpu.dot_dimension_numbers<[1], [0], [0], [1], [0, 0, 1, 1], [], []>} : vector<8x4xbf16>, vector<4x128xbf16>, vector<8x128xf32> -> vector<8x128xf32>
    %180 = arith.addf %174, %179 : vector<8x128xf32>
    %c0_263 = arith.constant 0 : index
    %c3_264 = arith.constant 3 : index
    %c0_265 = arith.constant 0 : index
    %c0_266 = arith.constant 0 : index
    %181 = vector.load %arg3[%c0_263, %c3_264, %c0_265, %c0_266] : memref<1x9x9x4xbf16, #tpu.memory_space<vmem>>, vector<1x1x8x4xbf16>
    %182 = vector.shape_cast %181 : vector<1x1x8x4xbf16> to vector<8x4xbf16>
    %c0_267 = arith.constant 0 : index
    %c1_268 = arith.constant 1 : index
    %c0_269 = arith.constant 0 : index
    %c0_270 = arith.constant 0 : index
    %183 = vector.load %arg6[%c0_267, %c1_268, %c0_269, %c0_270] : memref<3x3x4x128xbf16, #tpu.memory_space<vmem>>, vector<1x1x4x128xbf16>
    %184 = vector.shape_cast %183 : vector<1x1x4x128xbf16> to vector<4x128xbf16>
    %cst_271 = arith.constant dense<0.000000e+00> : vector<8x128xf32>
    %185 = tpu.matmul %182, %184, %cst_271 {dimension_numbers = #tpu.dot_dimension_numbers<[1], [0], [0], [1], [0, 0, 1, 1], [], []>} : vector<8x4xbf16>, vector<4x128xbf16>, vector<8x128xf32> -> vector<8x128xf32>
    %186 = arith.addf %180, %185 : vector<8x128xf32>
    %c0_272 = arith.constant 0 : index
    %c3_273 = arith.constant 3 : index
    %c1_274 = arith.constant 1 : index
    %c0_275 = arith.constant 0 : index
    %187 = vector.load %arg2[%c0_272, %c3_273, %c1_274, %c0_275] : memref<1x9x9x4xbf16, #tpu.memory_space<vmem>>, vector<1x1x8x4xbf16>
    %188 = vector.shape_cast %187 : vector<1x1x8x4xbf16> to vector<8x4xbf16>
    %c0_276 = arith.constant 0 : index
    %c2_277 = arith.constant 2 : index
    %c0_278 = arith.constant 0 : index
    %c0_279 = arith.constant 0 : index
    %189 = vector.load %arg6[%c0_276, %c2_277, %c0_278, %c0_279] : memref<3x3x4x128xbf16, #tpu.memory_space<vmem>>, vector<1x1x4x128xbf16>
    %190 = vector.shape_cast %189 : vector<1x1x4x128xbf16> to vector<4x128xbf16>
    %cst_280 = arith.constant dense<0.000000e+00> : vector<8x128xf32>
    %191 = tpu.matmul %188, %190, %cst_280 {dimension_numbers = #tpu.dot_dimension_numbers<[1], [0], [0], [1], [0, 0, 1, 1], [], []>} : vector<8x4xbf16>, vector<4x128xbf16>, vector<8x128xf32> -> vector<8x128xf32>
    %192 = arith.addf %186, %191 : vector<8x128xf32>
    %c0_281 = arith.constant 0 : index
    %c3_282 = arith.constant 3 : index
    %c0_283 = arith.constant 0 : index
    %c0_284 = arith.constant 0 : index
    %193 = vector.load %arg4[%c0_281, %c3_282, %c0_283, %c0_284] : memref<1x9x9x4xbf16, #tpu.memory_space<vmem>>, vector<1x1x8x4xbf16>
    %194 = vector.shape_cast %193 : vector<1x1x8x4xbf16> to vector<8x4xbf16>
    %c1_285 = arith.constant 1 : index
    %c0_286 = arith.constant 0 : index
    %c0_287 = arith.constant 0 : index
    %c0_288 = arith.constant 0 : index
    %195 = vector.load %arg6[%c1_285, %c0_286, %c0_287, %c0_288] : memref<3x3x4x128xbf16, #tpu.memory_space<vmem>>, vector<1x1x4x128xbf16>
    %196 = vector.shape_cast %195 : vector<1x1x4x128xbf16> to vector<4x128xbf16>
    %cst_289 = arith.constant dense<0.000000e+00> : vector<8x128xf32>
    %197 = tpu.matmul %194, %196, %cst_289 {dimension_numbers = #tpu.dot_dimension_numbers<[1], [0], [0], [1], [0, 0, 1, 1], [], []>} : vector<8x4xbf16>, vector<4x128xbf16>, vector<8x128xf32> -> vector<8x128xf32>
    %198 = arith.addf %192, %197 : vector<8x128xf32>
    %c0_290 = arith.constant 0 : index
    %c3_291 = arith.constant 3 : index
    %c0_292 = arith.constant 0 : index
    %c0_293 = arith.constant 0 : index
    %199 = vector.load %arg5[%c0_290, %c3_291, %c0_292, %c0_293] : memref<1x9x9x4xbf16, #tpu.memory_space<vmem>>, vector<1x1x8x4xbf16>
    %200 = vector.shape_cast %199 : vector<1x1x8x4xbf16> to vector<8x4xbf16>
    %c1_294 = arith.constant 1 : index
    %c1_295 = arith.constant 1 : index
    %c0_296 = arith.constant 0 : index
    %c0_297 = arith.constant 0 : index
    %201 = vector.load %arg6[%c1_294, %c1_295, %c0_296, %c0_297] : memref<3x3x4x128xbf16, #tpu.memory_space<vmem>>, vector<1x1x4x128xbf16>
    %202 = vector.shape_cast %201 : vector<1x1x4x128xbf16> to vector<4x128xbf16>
    %cst_298 = arith.constant dense<0.000000e+00> : vector<8x128xf32>
    %203 = tpu.matmul %200, %202, %cst_298 {dimension_numbers = #tpu.dot_dimension_numbers<[1], [0], [0], [1], [0, 0, 1, 1], [], []>} : vector<8x4xbf16>, vector<4x128xbf16>, vector<8x128xf32> -> vector<8x128xf32>
    %204 = arith.addf %198, %203 : vector<8x128xf32>
    %c0_299 = arith.constant 0 : index
    %c3_300 = arith.constant 3 : index
    %c1_301 = arith.constant 1 : index
    %c0_302 = arith.constant 0 : index
    %205 = vector.load %arg4[%c0_299, %c3_300, %c1_301, %c0_302] : memref<1x9x9x4xbf16, #tpu.memory_space<vmem>>, vector<1x1x8x4xbf16>
    %206 = vector.shape_cast %205 : vector<1x1x8x4xbf16> to vector<8x4xbf16>
    %c1_303 = arith.constant 1 : index
    %c2_304 = arith.constant 2 : index
    %c0_305 = arith.constant 0 : index
    %c0_306 = arith.constant 0 : index
    %207 = vector.load %arg6[%c1_303, %c2_304, %c0_305, %c0_306] : memref<3x3x4x128xbf16, #tpu.memory_space<vmem>>, vector<1x1x4x128xbf16>
    %208 = vector.shape_cast %207 : vector<1x1x4x128xbf16> to vector<4x128xbf16>
    %cst_307 = arith.constant dense<0.000000e+00> : vector<8x128xf32>
    %209 = tpu.matmul %206, %208, %cst_307 {dimension_numbers = #tpu.dot_dimension_numbers<[1], [0], [0], [1], [0, 0, 1, 1], [], []>} : vector<8x4xbf16>, vector<4x128xbf16>, vector<8x128xf32> -> vector<8x128xf32>
    %210 = arith.addf %204, %209 : vector<8x128xf32>
    %c0_308 = arith.constant 0 : index
    %c4 = arith.constant 4 : index
    %c0_309 = arith.constant 0 : index
    %c0_310 = arith.constant 0 : index
    %211 = vector.load %arg2[%c0_308, %c4, %c0_309, %c0_310] : memref<1x9x9x4xbf16, #tpu.memory_space<vmem>>, vector<1x1x8x4xbf16>
    %212 = vector.shape_cast %211 : vector<1x1x8x4xbf16> to vector<8x4xbf16>
    %c2_311 = arith.constant 2 : index
    %c0_312 = arith.constant 0 : index
    %c0_313 = arith.constant 0 : index
    %c0_314 = arith.constant 0 : index
    %213 = vector.load %arg6[%c2_311, %c0_312, %c0_313, %c0_314] : memref<3x3x4x128xbf16, #tpu.memory_space<vmem>>, vector<1x1x4x128xbf16>
    %214 = vector.shape_cast %213 : vector<1x1x4x128xbf16> to vector<4x128xbf16>
    %cst_315 = arith.constant dense<0.000000e+00> : vector<8x128xf32>
    %215 = tpu.matmul %212, %214, %cst_315 {dimension_numbers = #tpu.dot_dimension_numbers<[1], [0], [0], [1], [0, 0, 1, 1], [], []>} : vector<8x4xbf16>, vector<4x128xbf16>, vector<8x128xf32> -> vector<8x128xf32>
    %216 = arith.addf %210, %215 : vector<8x128xf32>
    %c0_316 = arith.constant 0 : index
    %c4_317 = arith.constant 4 : index
    %c0_318 = arith.constant 0 : index
    %c0_319 = arith.constant 0 : index
    %217 = vector.load %arg3[%c0_316, %c4_317, %c0_318, %c0_319] : memref<1x9x9x4xbf16, #tpu.memory_space<vmem>>, vector<1x1x8x4xbf16>
    %218 = vector.shape_cast %217 : vector<1x1x8x4xbf16> to vector<8x4xbf16>
    %c2_320 = arith.constant 2 : index
    %c1_321 = arith.constant 1 : index
    %c0_322 = arith.constant 0 : index
    %c0_323 = arith.constant 0 : index
    %219 = vector.load %arg6[%c2_320, %c1_321, %c0_322, %c0_323] : memref<3x3x4x128xbf16, #tpu.memory_space<vmem>>, vector<1x1x4x128xbf16>
    %220 = vector.shape_cast %219 : vector<1x1x4x128xbf16> to vector<4x128xbf16>
    %cst_324 = arith.constant dense<0.000000e+00> : vector<8x128xf32>
    %221 = tpu.matmul %218, %220, %cst_324 {dimension_numbers = #tpu.dot_dimension_numbers<[1], [0], [0], [1], [0, 0, 1, 1], [], []>} : vector<8x4xbf16>, vector<4x128xbf16>, vector<8x128xf32> -> vector<8x128xf32>
    %222 = arith.addf %216, %221 : vector<8x128xf32>
    %c0_325 = arith.constant 0 : index
    %c4_326 = arith.constant 4 : index
    %c1_327 = arith.constant 1 : index
    %c0_328 = arith.constant 0 : index
    %223 = vector.load %arg2[%c0_325, %c4_326, %c1_327, %c0_328] : memref<1x9x9x4xbf16, #tpu.memory_space<vmem>>, vector<1x1x8x4xbf16>
    %224 = vector.shape_cast %223 : vector<1x1x8x4xbf16> to vector<8x4xbf16>
    %c2_329 = arith.constant 2 : index
    %c2_330 = arith.constant 2 : index
    %c0_331 = arith.constant 0 : index
    %c0_332 = arith.constant 0 : index
    %225 = vector.load %arg6[%c2_329, %c2_330, %c0_331, %c0_332] : memref<3x3x4x128xbf16, #tpu.memory_space<vmem>>, vector<1x1x4x128xbf16>
    %226 = vector.shape_cast %225 : vector<1x1x4x128xbf16> to vector<4x128xbf16>
    %cst_333 = arith.constant dense<0.000000e+00> : vector<8x128xf32>
    %227 = tpu.matmul %224, %226, %cst_333 {dimension_numbers = #tpu.dot_dimension_numbers<[1], [0], [0], [1], [0, 0, 1, 1], [], []>} : vector<8x4xbf16>, vector<4x128xbf16>, vector<8x128xf32> -> vector<8x128xf32>
    %228 = arith.addf %222, %227 : vector<8x128xf32>
    %c0_334 = arith.constant 0 : index
    %c3_335 = arith.constant 3 : index
    %c0_336 = arith.constant 0 : index
    %c0_337 = arith.constant 0 : index
    %229 = vector.load %arg7[%c0_334, %c3_335, %c0_336, %c0_337] : memref<1x8x8x128xf32, #tpu.memory_space<vmem>>, vector<1x1x8x128xf32>
    %230 = vector.shape_cast %229 : vector<1x1x8x128xf32> to vector<8x128xf32>
    %231 = vector.shape_cast %228 : vector<8x128xf32> to vector<1x1x8x128xf32>
    tpu.vector_store %arg7[%c0_334, %c3_335, %c0_336, %c0_337], %231 {strides = array<i32>} : memref<1x8x8x128xf32, #tpu.memory_space<vmem>>, vector<1x1x8x128xf32>,
    %cst_338 = arith.constant 0.000000e+00 : f32
    %232 = vector.broadcast %cst_338 : f32 to vector<8x128xf32>
    %c0_339 = arith.constant 0 : index
    %c4_340 = arith.constant 4 : index
    %c0_341 = arith.constant 0 : index
    %c0_342 = arith.constant 0 : index
    %233 = vector.load %arg2[%c0_339, %c4_340, %c0_341, %c0_342] : memref<1x9x9x4xbf16, #tpu.memory_space<vmem>>, vector<1x1x8x4xbf16>
    %234 = vector.shape_cast %233 : vector<1x1x8x4xbf16> to vector<8x4xbf16>
    %c0_343 = arith.constant 0 : index
    %c0_344 = arith.constant 0 : index
    %c0_345 = arith.constant 0 : index
    %c0_346 = arith.constant 0 : index
    %235 = vector.load %arg6[%c0_343, %c0_344, %c0_345, %c0_346] : memref<3x3x4x128xbf16, #tpu.memory_space<vmem>>, vector<1x1x4x128xbf16>
    %236 = vector.shape_cast %235 : vector<1x1x4x128xbf16> to vector<4x128xbf16>
    %cst_347 = arith.constant dense<0.000000e+00> : vector<8x128xf32>
    %237 = tpu.matmul %234, %236, %cst_347 {dimension_numbers = #tpu.dot_dimension_numbers<[1], [0], [0], [1], [0, 0, 1, 1], [], []>} : vector<8x4xbf16>, vector<4x128xbf16>, vector<8x128xf32> -> vector<8x128xf32>
    %238 = arith.addf %232, %237 : vector<8x128xf32>
    %c0_348 = arith.constant 0 : index
    %c4_349 = arith.constant 4 : index
    %c0_350 = arith.constant 0 : index
    %c0_351 = arith.constant 0 : index
    %239 = vector.load %arg3[%c0_348, %c4_349, %c0_350, %c0_351] : memref<1x9x9x4xbf16, #tpu.memory_space<vmem>>, vector<1x1x8x4xbf16>
    %240 = vector.shape_cast %239 : vector<1x1x8x4xbf16> to vector<8x4xbf16>
    %c0_352 = arith.constant 0 : index
    %c1_353 = arith.constant 1 : index
    %c0_354 = arith.constant 0 : index
    %c0_355 = arith.constant 0 : index
    %241 = vector.load %arg6[%c0_352, %c1_353, %c0_354, %c0_355] : memref<3x3x4x128xbf16, #tpu.memory_space<vmem>>, vector<1x1x4x128xbf16>
    %242 = vector.shape_cast %241 : vector<1x1x4x128xbf16> to vector<4x128xbf16>
    %cst_356 = arith.constant dense<0.000000e+00> : vector<8x128xf32>
    %243 = tpu.matmul %240, %242, %cst_356 {dimension_numbers = #tpu.dot_dimension_numbers<[1], [0], [0], [1], [0, 0, 1, 1], [], []>} : vector<8x4xbf16>, vector<4x128xbf16>, vector<8x128xf32> -> vector<8x128xf32>
    %244 = arith.addf %238, %243 : vector<8x128xf32>
    %c0_357 = arith.constant 0 : index
    %c4_358 = arith.constant 4 : index
    %c1_359 = arith.constant 1 : index
    %c0_360 = arith.constant 0 : index
    %245 = vector.load %arg2[%c0_357, %c4_358, %c1_359, %c0_360] : memref<1x9x9x4xbf16, #tpu.memory_space<vmem>>, vector<1x1x8x4xbf16>
    %246 = vector.shape_cast %245 : vector<1x1x8x4xbf16> to vector<8x4xbf16>
    %c0_361 = arith.constant 0 : index
    %c2_362 = arith.constant 2 : index
    %c0_363 = arith.constant 0 : index
    %c0_364 = arith.constant 0 : index
    %247 = vector.load %arg6[%c0_361, %c2_362, %c0_363, %c0_364] : memref<3x3x4x128xbf16, #tpu.memory_space<vmem>>, vector<1x1x4x128xbf16>
    %248 = vector.shape_cast %247 : vector<1x1x4x128xbf16> to vector<4x128xbf16>
    %cst_365 = arith.constant dense<0.000000e+00> : vector<8x128xf32>
    %249 = tpu.matmul %246, %248, %cst_365 {dimension_numbers = #tpu.dot_dimension_numbers<[1], [0], [0], [1], [0, 0, 1, 1], [], []>} : vector<8x4xbf16>, vector<4x128xbf16>, vector<8x128xf32> -> vector<8x128xf32>
    %250 = arith.addf %244, %249 : vector<8x128xf32>
    %c0_366 = arith.constant 0 : index
    %c4_367 = arith.constant 4 : index
    %c0_368 = arith.constant 0 : index
    %c0_369 = arith.constant 0 : index
    %251 = vector.load %arg4[%c0_366, %c4_367, %c0_368, %c0_369] : memref<1x9x9x4xbf16, #tpu.memory_space<vmem>>, vector<1x1x8x4xbf16>
    %252 = vector.shape_cast %251 : vector<1x1x8x4xbf16> to vector<8x4xbf16>
    %c1_370 = arith.constant 1 : index
    %c0_371 = arith.constant 0 : index
    %c0_372 = arith.constant 0 : index
    %c0_373 = arith.constant 0 : index
    %253 = vector.load %arg6[%c1_370, %c0_371, %c0_372, %c0_373] : memref<3x3x4x128xbf16, #tpu.memory_space<vmem>>, vector<1x1x4x128xbf16>
    %254 = vector.shape_cast %253 : vector<1x1x4x128xbf16> to vector<4x128xbf16>
    %cst_374 = arith.constant dense<0.000000e+00> : vector<8x128xf32>
    %255 = tpu.matmul %252, %254, %cst_374 {dimension_numbers = #tpu.dot_dimension_numbers<[1], [0], [0], [1], [0, 0, 1, 1], [], []>} : vector<8x4xbf16>, vector<4x128xbf16>, vector<8x128xf32> -> vector<8x128xf32>
    %256 = arith.addf %250, %255 : vector<8x128xf32>
    %c0_375 = arith.constant 0 : index
    %c4_376 = arith.constant 4 : index
    %c0_377 = arith.constant 0 : index
    %c0_378 = arith.constant 0 : index
    %257 = vector.load %arg5[%c0_375, %c4_376, %c0_377, %c0_378] : memref<1x9x9x4xbf16, #tpu.memory_space<vmem>>, vector<1x1x8x4xbf16>
    %258 = vector.shape_cast %257 : vector<1x1x8x4xbf16> to vector<8x4xbf16>
    %c1_379 = arith.constant 1 : index
    %c1_380 = arith.constant 1 : index
    %c0_381 = arith.constant 0 : index
    %c0_382 = arith.constant 0 : index
    %259 = vector.load %arg6[%c1_379, %c1_380, %c0_381, %c0_382] : memref<3x3x4x128xbf16, #tpu.memory_space<vmem>>, vector<1x1x4x128xbf16>
    %260 = vector.shape_cast %259 : vector<1x1x4x128xbf16> to vector<4x128xbf16>
    %cst_383 = arith.constant dense<0.000000e+00> : vector<8x128xf32>
    %261 = tpu.matmul %258, %260, %cst_383 {dimension_numbers = #tpu.dot_dimension_numbers<[1], [0], [0], [1], [0, 0, 1, 1], [], []>} : vector<8x4xbf16>, vector<4x128xbf16>, vector<8x128xf32> -> vector<8x128xf32>
    %262 = arith.addf %256, %261 : vector<8x128xf32>
    %c0_384 = arith.constant 0 : index
    %c4_385 = arith.constant 4 : index
    %c1_386 = arith.constant 1 : index
    %c0_387 = arith.constant 0 : index
    %263 = vector.load %arg4[%c0_384, %c4_385, %c1_386, %c0_387] : memref<1x9x9x4xbf16, #tpu.memory_space<vmem>>, vector<1x1x8x4xbf16>
    %264 = vector.shape_cast %263 : vector<1x1x8x4xbf16> to vector<8x4xbf16>
    %c1_388 = arith.constant 1 : index
    %c2_389 = arith.constant 2 : index
    %c0_390 = arith.constant 0 : index
    %c0_391 = arith.constant 0 : index
    %265 = vector.load %arg6[%c1_388, %c2_389, %c0_390, %c0_391] : memref<3x3x4x128xbf16, #tpu.memory_space<vmem>>, vector<1x1x4x128xbf16>
    %266 = vector.shape_cast %265 : vector<1x1x4x128xbf16> to vector<4x128xbf16>
    %cst_392 = arith.constant dense<0.000000e+00> : vector<8x128xf32>
    %267 = tpu.matmul %264, %266, %cst_392 {dimension_numbers = #tpu.dot_dimension_numbers<[1], [0], [0], [1], [0, 0, 1, 1], [], []>} : vector<8x4xbf16>, vector<4x128xbf16>, vector<8x128xf32> -> vector<8x128xf32>
    %268 = arith.addf %262, %267 : vector<8x128xf32>
    %c0_393 = arith.constant 0 : index
    %c5 = arith.constant 5 : index
    %c0_394 = arith.constant 0 : index
    %c0_395 = arith.constant 0 : index
    %269 = vector.load %arg2[%c0_393, %c5, %c0_394, %c0_395] : memref<1x9x9x4xbf16, #tpu.memory_space<vmem>>, vector<1x1x8x4xbf16>
    %270 = vector.shape_cast %269 : vector<1x1x8x4xbf16> to vector<8x4xbf16>
    %c2_396 = arith.constant 2 : index
    %c0_397 = arith.constant 0 : index
    %c0_398 = arith.constant 0 : index
    %c0_399 = arith.constant 0 : index
    %271 = vector.load %arg6[%c2_396, %c0_397, %c0_398, %c0_399] : memref<3x3x4x128xbf16, #tpu.memory_space<vmem>>, vector<1x1x4x128xbf16>
    %272 = vector.shape_cast %271 : vector<1x1x4x128xbf16> to vector<4x128xbf16>
    %cst_400 = arith.constant dense<0.000000e+00> : vector<8x128xf32>
    %273 = tpu.matmul %270, %272, %cst_400 {dimension_numbers = #tpu.dot_dimension_numbers<[1], [0], [0], [1], [0, 0, 1, 1], [], []>} : vector<8x4xbf16>, vector<4x128xbf16>, vector<8x128xf32> -> vector<8x128xf32>
    %274 = arith.addf %268, %273 : vector<8x128xf32>
    %c0_401 = arith.constant 0 : index
    %c5_402 = arith.constant 5 : index
    %c0_403 = arith.constant 0 : index
    %c0_404 = arith.constant 0 : index
    %275 = vector.load %arg3[%c0_401, %c5_402, %c0_403, %c0_404] : memref<1x9x9x4xbf16, #tpu.memory_space<vmem>>, vector<1x1x8x4xbf16>
    %276 = vector.shape_cast %275 : vector<1x1x8x4xbf16> to vector<8x4xbf16>
    %c2_405 = arith.constant 2 : index
    %c1_406 = arith.constant 1 : index
    %c0_407 = arith.constant 0 : index
    %c0_408 = arith.constant 0 : index
    %277 = vector.load %arg6[%c2_405, %c1_406, %c0_407, %c0_408] : memref<3x3x4x128xbf16, #tpu.memory_space<vmem>>, vector<1x1x4x128xbf16>
    %278 = vector.shape_cast %277 : vector<1x1x4x128xbf16> to vector<4x128xbf16>
    %cst_409 = arith.constant dense<0.000000e+00> : vector<8x128xf32>
    %279 = tpu.matmul %276, %278, %cst_409 {dimension_numbers = #tpu.dot_dimension_numbers<[1], [0], [0], [1], [0, 0, 1, 1], [], []>} : vector<8x4xbf16>, vector<4x128xbf16>, vector<8x128xf32> -> vector<8x128xf32>
    %280 = arith.addf %274, %279 : vector<8x128xf32>
    %c0_410 = arith.constant 0 : index
    %c5_411 = arith.constant 5 : index
    %c1_412 = arith.constant 1 : index
    %c0_413 = arith.constant 0 : index
    %281 = vector.load %arg2[%c0_410, %c5_411, %c1_412, %c0_413] : memref<1x9x9x4xbf16, #tpu.memory_space<vmem>>, vector<1x1x8x4xbf16>
    %282 = vector.shape_cast %281 : vector<1x1x8x4xbf16> to vector<8x4xbf16>
    %c2_414 = arith.constant 2 : index
    %c2_415 = arith.constant 2 : index
    %c0_416 = arith.constant 0 : index
    %c0_417 = arith.constant 0 : index
    %283 = vector.load %arg6[%c2_414, %c2_415, %c0_416, %c0_417] : memref<3x3x4x128xbf16, #tpu.memory_space<vmem>>, vector<1x1x4x128xbf16>
    %284 = vector.shape_cast %283 : vector<1x1x4x128xbf16> to vector<4x128xbf16>
    %cst_418 = arith.constant dense<0.000000e+00> : vector<8x128xf32>
    %285 = tpu.matmul %282, %284, %cst_418 {dimension_numbers = #tpu.dot_dimension_numbers<[1], [0], [0], [1], [0, 0, 1, 1], [], []>} : vector<8x4xbf16>, vector<4x128xbf16>, vector<8x128xf32> -> vector<8x128xf32>
    %286 = arith.addf %280, %285 : vector<8x128xf32>
    %c0_419 = arith.constant 0 : index
    %c4_420 = arith.constant 4 : index
    %c0_421 = arith.constant 0 : index
    %c0_422 = arith.constant 0 : index
    %287 = vector.load %arg7[%c0_419, %c4_420, %c0_421, %c0_422] : memref<1x8x8x128xf32, #tpu.memory_space<vmem>>, vector<1x1x8x128xf32>
    %288 = vector.shape_cast %287 : vector<1x1x8x128xf32> to vector<8x128xf32>
    %289 = vector.shape_cast %286 : vector<8x128xf32> to vector<1x1x8x128xf32>
    tpu.vector_store %arg7[%c0_419, %c4_420, %c0_421, %c0_422], %289 {strides = array<i32>} : memref<1x8x8x128xf32, #tpu.memory_space<vmem>>, vector<1x1x8x128xf32>,
    %cst_423 = arith.constant 0.000000e+00 : f32
    %290 = vector.broadcast %cst_423 : f32 to vector<8x128xf32>
    %c0_424 = arith.constant 0 : index
    %c5_425 = arith.constant 5 : index
    %c0_426 = arith.constant 0 : index
    %c0_427 = arith.constant 0 : index
    %291 = vector.load %arg2[%c0_424, %c5_425, %c0_426, %c0_427] : memref<1x9x9x4xbf16, #tpu.memory_space<vmem>>, vector<1x1x8x4xbf16>
    %292 = vector.shape_cast %291 : vector<1x1x8x4xbf16> to vector<8x4xbf16>
    %c0_428 = arith.constant 0 : index
    %c0_429 = arith.constant 0 : index
    %c0_430 = arith.constant 0 : index
    %c0_431 = arith.constant 0 : index
    %293 = vector.load %arg6[%c0_428, %c0_429, %c0_430, %c0_431] : memref<3x3x4x128xbf16, #tpu.memory_space<vmem>>, vector<1x1x4x128xbf16>
    %294 = vector.shape_cast %293 : vector<1x1x4x128xbf16> to vector<4x128xbf16>
    %cst_432 = arith.constant dense<0.000000e+00> : vector<8x128xf32>
    %295 = tpu.matmul %292, %294, %cst_432 {dimension_numbers = #tpu.dot_dimension_numbers<[1], [0], [0], [1], [0, 0, 1, 1], [], []>} : vector<8x4xbf16>, vector<4x128xbf16>, vector<8x128xf32> -> vector<8x128xf32>
    %296 = arith.addf %290, %295 : vector<8x128xf32>
    %c0_433 = arith.constant 0 : index
    %c5_434 = arith.constant 5 : index
    %c0_435 = arith.constant 0 : index
    %c0_436 = arith.constant 0 : index
    %297 = vector.load %arg3[%c0_433, %c5_434, %c0_435, %c0_436] : memref<1x9x9x4xbf16, #tpu.memory_space<vmem>>, vector<1x1x8x4xbf16>
    %298 = vector.shape_cast %297 : vector<1x1x8x4xbf16> to vector<8x4xbf16>
    %c0_437 = arith.constant 0 : index
    %c1_438 = arith.constant 1 : index
    %c0_439 = arith.constant 0 : index
    %c0_440 = arith.constant 0 : index
    %299 = vector.load %arg6[%c0_437, %c1_438, %c0_439, %c0_440] : memref<3x3x4x128xbf16, #tpu.memory_space<vmem>>, vector<1x1x4x128xbf16>
    %300 = vector.shape_cast %299 : vector<1x1x4x128xbf16> to vector<4x128xbf16>
    %cst_441 = arith.constant dense<0.000000e+00> : vector<8x128xf32>
    %301 = tpu.matmul %298, %300, %cst_441 {dimension_numbers = #tpu.dot_dimension_numbers<[1], [0], [0], [1], [0, 0, 1, 1], [], []>} : vector<8x4xbf16>, vector<4x128xbf16>, vector<8x128xf32> -> vector<8x128xf32>
    %302 = arith.addf %296, %301 : vector<8x128xf32>
    %c0_442 = arith.constant 0 : index
    %c5_443 = arith.constant 5 : index
    %c1_444 = arith.constant 1 : index
    %c0_445 = arith.constant 0 : index
    %303 = vector.load %arg2[%c0_442, %c5_443, %c1_444, %c0_445] : memref<1x9x9x4xbf16, #tpu.memory_space<vmem>>, vector<1x1x8x4xbf16>
    %304 = vector.shape_cast %303 : vector<1x1x8x4xbf16> to vector<8x4xbf16>
    %c0_446 = arith.constant 0 : index
    %c2_447 = arith.constant 2 : index
    %c0_448 = arith.constant 0 : index
    %c0_449 = arith.constant 0 : index
    %305 = vector.load %arg6[%c0_446, %c2_447, %c0_448, %c0_449] : memref<3x3x4x128xbf16, #tpu.memory_space<vmem>>, vector<1x1x4x128xbf16>
    %306 = vector.shape_cast %305 : vector<1x1x4x128xbf16> to vector<4x128xbf16>
    %cst_450 = arith.constant dense<0.000000e+00> : vector<8x128xf32>
    %307 = tpu.matmul %304, %306, %cst_450 {dimension_numbers = #tpu.dot_dimension_numbers<[1], [0], [0], [1], [0, 0, 1, 1], [], []>} : vector<8x4xbf16>, vector<4x128xbf16>, vector<8x128xf32> -> vector<8x128xf32>
    %308 = arith.addf %302, %307 : vector<8x128xf32>
    %c0_451 = arith.constant 0 : index
    %c5_452 = arith.constant 5 : index
    %c0_453 = arith.constant 0 : index
    %c0_454 = arith.constant 0 : index
    %309 = vector.load %arg4[%c0_451, %c5_452, %c0_453, %c0_454] : memref<1x9x9x4xbf16, #tpu.memory_space<vmem>>, vector<1x1x8x4xbf16>
    %310 = vector.shape_cast %309 : vector<1x1x8x4xbf16> to vector<8x4xbf16>
    %c1_455 = arith.constant 1 : index
    %c0_456 = arith.constant 0 : index
    %c0_457 = arith.constant 0 : index
    %c0_458 = arith.constant 0 : index
    %311 = vector.load %arg6[%c1_455, %c0_456, %c0_457, %c0_458] : memref<3x3x4x128xbf16, #tpu.memory_space<vmem>>, vector<1x1x4x128xbf16>
    %312 = vector.shape_cast %311 : vector<1x1x4x128xbf16> to vector<4x128xbf16>
    %cst_459 = arith.constant dense<0.000000e+00> : vector<8x128xf32>
    %313 = tpu.matmul %310, %312, %cst_459 {dimension_numbers = #tpu.dot_dimension_numbers<[1], [0], [0], [1], [0, 0, 1, 1], [], []>} : vector<8x4xbf16>, vector<4x128xbf16>, vector<8x128xf32> -> vector<8x128xf32>
    %314 = arith.addf %308, %313 : vector<8x128xf32>
    %c0_460 = arith.constant 0 : index
    %c5_461 = arith.constant 5 : index
    %c0_462 = arith.constant 0 : index
    %c0_463 = arith.constant 0 : index
    %315 = vector.load %arg5[%c0_460, %c5_461, %c0_462, %c0_463] : memref<1x9x9x4xbf16, #tpu.memory_space<vmem>>, vector<1x1x8x4xbf16>
    %316 = vector.shape_cast %315 : vector<1x1x8x4xbf16> to vector<8x4xbf16>
    %c1_464 = arith.constant 1 : index
    %c1_465 = arith.constant 1 : index
    %c0_466 = arith.constant 0 : index
    %c0_467 = arith.constant 0 : index
    %317 = vector.load %arg6[%c1_464, %c1_465, %c0_466, %c0_467] : memref<3x3x4x128xbf16, #tpu.memory_space<vmem>>, vector<1x1x4x128xbf16>
    %318 = vector.shape_cast %317 : vector<1x1x4x128xbf16> to vector<4x128xbf16>
    %cst_468 = arith.constant dense<0.000000e+00> : vector<8x128xf32>
    %319 = tpu.matmul %316, %318, %cst_468 {dimension_numbers = #tpu.dot_dimension_numbers<[1], [0], [0], [1], [0, 0, 1, 1], [], []>} : vector<8x4xbf16>, vector<4x128xbf16>, vector<8x128xf32> -> vector<8x128xf32>
    %320 = arith.addf %314, %319 : vector<8x128xf32>
    %c0_469 = arith.constant 0 : index
    %c5_470 = arith.constant 5 : index
    %c1_471 = arith.constant 1 : index
    %c0_472 = arith.constant 0 : index
    %321 = vector.load %arg4[%c0_469, %c5_470, %c1_471, %c0_472] : memref<1x9x9x4xbf16, #tpu.memory_space<vmem>>, vector<1x1x8x4xbf16>
    %322 = vector.shape_cast %321 : vector<1x1x8x4xbf16> to vector<8x4xbf16>
    %c1_473 = arith.constant 1 : index
    %c2_474 = arith.constant 2 : index
    %c0_475 = arith.constant 0 : index
    %c0_476 = arith.constant 0 : index
    %323 = vector.load %arg6[%c1_473, %c2_474, %c0_475, %c0_476] : memref<3x3x4x128xbf16, #tpu.memory_space<vmem>>, vector<1x1x4x128xbf16>
    %324 = vector.shape_cast %323 : vector<1x1x4x128xbf16> to vector<4x128xbf16>
    %cst_477 = arith.constant dense<0.000000e+00> : vector<8x128xf32>
    %325 = tpu.matmul %322, %324, %cst_477 {dimension_numbers = #tpu.dot_dimension_numbers<[1], [0], [0], [1], [0, 0, 1, 1], [], []>} : vector<8x4xbf16>, vector<4x128xbf16>, vector<8x128xf32> -> vector<8x128xf32>
    %326 = arith.addf %320, %325 : vector<8x128xf32>
    %c0_478 = arith.constant 0 : index
    %c6 = arith.constant 6 : index
    %c0_479 = arith.constant 0 : index
    %c0_480 = arith.constant 0 : index
    %327 = vector.load %arg2[%c0_478, %c6, %c0_479, %c0_480] : memref<1x9x9x4xbf16, #tpu.memory_space<vmem>>, vector<1x1x8x4xbf16>
    %328 = vector.shape_cast %327 : vector<1x1x8x4xbf16> to vector<8x4xbf16>
    %c2_481 = arith.constant 2 : index
    %c0_482 = arith.constant 0 : index
    %c0_483 = arith.constant 0 : index
    %c0_484 = arith.constant 0 : index
    %329 = vector.load %arg6[%c2_481, %c0_482, %c0_483, %c0_484] : memref<3x3x4x128xbf16, #tpu.memory_space<vmem>>, vector<1x1x4x128xbf16>
    %330 = vector.shape_cast %329 : vector<1x1x4x128xbf16> to vector<4x128xbf16>
    %cst_485 = arith.constant dense<0.000000e+00> : vector<8x128xf32>
    %331 = tpu.matmul %328, %330, %cst_485 {dimension_numbers = #tpu.dot_dimension_numbers<[1], [0], [0], [1], [0, 0, 1, 1], [], []>} : vector<8x4xbf16>, vector<4x128xbf16>, vector<8x128xf32> -> vector<8x128xf32>
    %332 = arith.addf %326, %331 : vector<8x128xf32>
    %c0_486 = arith.constant 0 : index
    %c6_487 = arith.constant 6 : index
    %c0_488 = arith.constant 0 : index
    %c0_489 = arith.constant 0 : index
    %333 = vector.load %arg3[%c0_486, %c6_487, %c0_488, %c0_489] : memref<1x9x9x4xbf16, #tpu.memory_space<vmem>>, vector<1x1x8x4xbf16>
    %334 = vector.shape_cast %333 : vector<1x1x8x4xbf16> to vector<8x4xbf16>
    %c2_490 = arith.constant 2 : index
    %c1_491 = arith.constant 1 : index
    %c0_492 = arith.constant 0 : index
    %c0_493 = arith.constant 0 : index
    %335 = vector.load %arg6[%c2_490, %c1_491, %c0_492, %c0_493] : memref<3x3x4x128xbf16, #tpu.memory_space<vmem>>, vector<1x1x4x128xbf16>
    %336 = vector.shape_cast %335 : vector<1x1x4x128xbf16> to vector<4x128xbf16>
    %cst_494 = arith.constant dense<0.000000e+00> : vector<8x128xf32>
    %337 = tpu.matmul %334, %336, %cst_494 {dimension_numbers = #tpu.dot_dimension_numbers<[1], [0], [0], [1], [0, 0, 1, 1], [], []>} : vector<8x4xbf16>, vector<4x128xbf16>, vector<8x128xf32> -> vector<8x128xf32>
    %338 = arith.addf %332, %337 : vector<8x128xf32>
    %c0_495 = arith.constant 0 : index
    %c6_496 = arith.constant 6 : index
    %c1_497 = arith.constant 1 : index
    %c0_498 = arith.constant 0 : index
    %339 = vector.load %arg2[%c0_495, %c6_496, %c1_497, %c0_498] : memref<1x9x9x4xbf16, #tpu.memory_space<vmem>>, vector<1x1x8x4xbf16>
    %340 = vector.shape_cast %339 : vector<1x1x8x4xbf16> to vector<8x4xbf16>
    %c2_499 = arith.constant 2 : index
    %c2_500 = arith.constant 2 : index
    %c0_501 = arith.constant 0 : index
    %c0_502 = arith.constant 0 : index
    %341 = vector.load %arg6[%c2_499, %c2_500, %c0_501, %c0_502] : memref<3x3x4x128xbf16, #tpu.memory_space<vmem>>, vector<1x1x4x128xbf16>
    %342 = vector.shape_cast %341 : vector<1x1x4x128xbf16> to vector<4x128xbf16>
    %cst_503 = arith.constant dense<0.000000e+00> : vector<8x128xf32>
    %343 = tpu.matmul %340, %342, %cst_503 {dimension_numbers = #tpu.dot_dimension_numbers<[1], [0], [0], [1], [0, 0, 1, 1], [], []>} : vector<8x4xbf16>, vector<4x128xbf16>, vector<8x128xf32> -> vector<8x128xf32>
    %344 = arith.addf %338, %343 : vector<8x128xf32>
    %c0_504 = arith.constant 0 : index
    %c5_505 = arith.constant 5 : index
    %c0_506 = arith.constant 0 : index
    %c0_507 = arith.constant 0 : index
    %345 = vector.load %arg7[%c0_504, %c5_505, %c0_506, %c0_507] : memref<1x8x8x128xf32, #tpu.memory_space<vmem>>, vector<1x1x8x128xf32>
    %346 = vector.shape_cast %345 : vector<1x1x8x128xf32> to vector<8x128xf32>
    %347 = vector.shape_cast %344 : vector<8x128xf32> to vector<1x1x8x128xf32>
    tpu.vector_store %arg7[%c0_504, %c5_505, %c0_506, %c0_507], %347 {strides = array<i32>} : memref<1x8x8x128xf32, #tpu.memory_space<vmem>>, vector<1x1x8x128xf32>,
    %cst_508 = arith.constant 0.000000e+00 : f32
    %348 = vector.broadcast %cst_508 : f32 to vector<8x128xf32>
    %c0_509 = arith.constant 0 : index
    %c6_510 = arith.constant 6 : index
    %c0_511 = arith.constant 0 : index
    %c0_512 = arith.constant 0 : index
    %349 = vector.load %arg2[%c0_509, %c6_510, %c0_511, %c0_512] : memref<1x9x9x4xbf16, #tpu.memory_space<vmem>>, vector<1x1x8x4xbf16>
    %350 = vector.shape_cast %349 : vector<1x1x8x4xbf16> to vector<8x4xbf16>
    %c0_513 = arith.constant 0 : index
    %c0_514 = arith.constant 0 : index
    %c0_515 = arith.constant 0 : index
    %c0_516 = arith.constant 0 : index
    %351 = vector.load %arg6[%c0_513, %c0_514, %c0_515, %c0_516] : memref<3x3x4x128xbf16, #tpu.memory_space<vmem>>, vector<1x1x4x128xbf16>
    %352 = vector.shape_cast %351 : vector<1x1x4x128xbf16> to vector<4x128xbf16>
    %cst_517 = arith.constant dense<0.000000e+00> : vector<8x128xf32>
    %353 = tpu.matmul %350, %352, %cst_517 {dimension_numbers = #tpu.dot_dimension_numbers<[1], [0], [0], [1], [0, 0, 1, 1], [], []>} : vector<8x4xbf16>, vector<4x128xbf16>, vector<8x128xf32> -> vector<8x128xf32>
    %354 = arith.addf %348, %353 : vector<8x128xf32>
    %c0_518 = arith.constant 0 : index
    %c6_519 = arith.constant 6 : index
    %c0_520 = arith.constant 0 : index
    %c0_521 = arith.constant 0 : index
    %355 = vector.load %arg3[%c0_518, %c6_519, %c0_520, %c0_521] : memref<1x9x9x4xbf16, #tpu.memory_space<vmem>>, vector<1x1x8x4xbf16>
    %356 = vector.shape_cast %355 : vector<1x1x8x4xbf16> to vector<8x4xbf16>
    %c0_522 = arith.constant 0 : index
    %c1_523 = arith.constant 1 : index
    %c0_524 = arith.constant 0 : index
    %c0_525 = arith.constant 0 : index
    %357 = vector.load %arg6[%c0_522, %c1_523, %c0_524, %c0_525] : memref<3x3x4x128xbf16, #tpu.memory_space<vmem>>, vector<1x1x4x128xbf16>
    %358 = vector.shape_cast %357 : vector<1x1x4x128xbf16> to vector<4x128xbf16>
    %cst_526 = arith.constant dense<0.000000e+00> : vector<8x128xf32>
    %359 = tpu.matmul %356, %358, %cst_526 {dimension_numbers = #tpu.dot_dimension_numbers<[1], [0], [0], [1], [0, 0, 1, 1], [], []>} : vector<8x4xbf16>, vector<4x128xbf16>, vector<8x128xf32> -> vector<8x128xf32>
    %360 = arith.addf %354, %359 : vector<8x128xf32>
    %c0_527 = arith.constant 0 : index
    %c6_528 = arith.constant 6 : index
    %c1_529 = arith.constant 1 : index
    %c0_530 = arith.constant 0 : index
    %361 = vector.load %arg2[%c0_527, %c6_528, %c1_529, %c0_530] : memref<1x9x9x4xbf16, #tpu.memory_space<vmem>>, vector<1x1x8x4xbf16>
    %362 = vector.shape_cast %361 : vector<1x1x8x4xbf16> to vector<8x4xbf16>
    %c0_531 = arith.constant 0 : index
    %c2_532 = arith.constant 2 : index
    %c0_533 = arith.constant 0 : index
    %c0_534 = arith.constant 0 : index
    %363 = vector.load %arg6[%c0_531, %c2_532, %c0_533, %c0_534] : memref<3x3x4x128xbf16, #tpu.memory_space<vmem>>, vector<1x1x4x128xbf16>
    %364 = vector.shape_cast %363 : vector<1x1x4x128xbf16> to vector<4x128xbf16>
    %cst_535 = arith.constant dense<0.000000e+00> : vector<8x128xf32>
    %365 = tpu.matmul %362, %364, %cst_535 {dimension_numbers = #tpu.dot_dimension_numbers<[1], [0], [0], [1], [0, 0, 1, 1], [], []>} : vector<8x4xbf16>, vector<4x128xbf16>, vector<8x128xf32> -> vector<8x128xf32>
    %366 = arith.addf %360, %365 : vector<8x128xf32>
    %c0_536 = arith.constant 0 : index
    %c6_537 = arith.constant 6 : index
    %c0_538 = arith.constant 0 : index
    %c0_539 = arith.constant 0 : index
    %367 = vector.load %arg4[%c0_536, %c6_537, %c0_538, %c0_539] : memref<1x9x9x4xbf16, #tpu.memory_space<vmem>>, vector<1x1x8x4xbf16>
    %368 = vector.shape_cast %367 : vector<1x1x8x4xbf16> to vector<8x4xbf16>
    %c1_540 = arith.constant 1 : index
    %c0_541 = arith.constant 0 : index
    %c0_542 = arith.constant 0 : index
    %c0_543 = arith.constant 0 : index
    %369 = vector.load %arg6[%c1_540, %c0_541, %c0_542, %c0_543] : memref<3x3x4x128xbf16, #tpu.memory_space<vmem>>, vector<1x1x4x128xbf16>
    %370 = vector.shape_cast %369 : vector<1x1x4x128xbf16> to vector<4x128xbf16>
    %cst_544 = arith.constant dense<0.000000e+00> : vector<8x128xf32>
    %371 = tpu.matmul %368, %370, %cst_544 {dimension_numbers = #tpu.dot_dimension_numbers<[1], [0], [0], [1], [0, 0, 1, 1], [], []>} : vector<8x4xbf16>, vector<4x128xbf16>, vector<8x128xf32> -> vector<8x128xf32>
    %372 = arith.addf %366, %371 : vector<8x128xf32>
    %c0_545 = arith.constant 0 : index
    %c6_546 = arith.constant 6 : index
    %c0_547 = arith.constant 0 : index
    %c0_548 = arith.constant 0 : index
    %373 = vector.load %arg5[%c0_545, %c6_546, %c0_547, %c0_548] : memref<1x9x9x4xbf16, #tpu.memory_space<vmem>>, vector<1x1x8x4xbf16>
    %374 = vector.shape_cast %373 : vector<1x1x8x4xbf16> to vector<8x4xbf16>
    %c1_549 = arith.constant 1 : index
    %c1_550 = arith.constant 1 : index
    %c0_551 = arith.constant 0 : index
    %c0_552 = arith.constant 0 : index
    %375 = vector.load %arg6[%c1_549, %c1_550, %c0_551, %c0_552] : memref<3x3x4x128xbf16, #tpu.memory_space<vmem>>, vector<1x1x4x128xbf16>
    %376 = vector.shape_cast %375 : vector<1x1x4x128xbf16> to vector<4x128xbf16>
    %cst_553 = arith.constant dense<0.000000e+00> : vector<8x128xf32>
    %377 = tpu.matmul %374, %376, %cst_553 {dimension_numbers = #tpu.dot_dimension_numbers<[1], [0], [0], [1], [0, 0, 1, 1], [], []>} : vector<8x4xbf16>, vector<4x128xbf16>, vector<8x128xf32> -> vector<8x128xf32>
    %378 = arith.addf %372, %377 : vector<8x128xf32>
    %c0_554 = arith.constant 0 : index
    %c6_555 = arith.constant 6 : index
    %c1_556 = arith.constant 1 : index
    %c0_557 = arith.constant 0 : index
    %379 = vector.load %arg4[%c0_554, %c6_555, %c1_556, %c0_557] : memref<1x9x9x4xbf16, #tpu.memory_space<vmem>>, vector<1x1x8x4xbf16>
    %380 = vector.shape_cast %379 : vector<1x1x8x4xbf16> to vector<8x4xbf16>
    %c1_558 = arith.constant 1 : index
    %c2_559 = arith.constant 2 : index
    %c0_560 = arith.constant 0 : index
    %c0_561 = arith.constant 0 : index
    %381 = vector.load %arg6[%c1_558, %c2_559, %c0_560, %c0_561] : memref<3x3x4x128xbf16, #tpu.memory_space<vmem>>, vector<1x1x4x128xbf16>
    %382 = vector.shape_cast %381 : vector<1x1x4x128xbf16> to vector<4x128xbf16>
    %cst_562 = arith.constant dense<0.000000e+00> : vector<8x128xf32>
    %383 = tpu.matmul %380, %382, %cst_562 {dimension_numbers = #tpu.dot_dimension_numbers<[1], [0], [0], [1], [0, 0, 1, 1], [], []>} : vector<8x4xbf16>, vector<4x128xbf16>, vector<8x128xf32> -> vector<8x128xf32>
    %384 = arith.addf %378, %383 : vector<8x128xf32>
    %c0_563 = arith.constant 0 : index
    %c7 = arith.constant 7 : index
    %c0_564 = arith.constant 0 : index
    %c0_565 = arith.constant 0 : index
    %385 = vector.load %arg2[%c0_563, %c7, %c0_564, %c0_565] : memref<1x9x9x4xbf16, #tpu.memory_space<vmem>>, vector<1x1x8x4xbf16>
    %386 = vector.shape_cast %385 : vector<1x1x8x4xbf16> to vector<8x4xbf16>
    %c2_566 = arith.constant 2 : index
    %c0_567 = arith.constant 0 : index
    %c0_568 = arith.constant 0 : index
    %c0_569 = arith.constant 0 : index
    %387 = vector.load %arg6[%c2_566, %c0_567, %c0_568, %c0_569] : memref<3x3x4x128xbf16, #tpu.memory_space<vmem>>, vector<1x1x4x128xbf16>
    %388 = vector.shape_cast %387 : vector<1x1x4x128xbf16> to vector<4x128xbf16>
    %cst_570 = arith.constant dense<0.000000e+00> : vector<8x128xf32>
    %389 = tpu.matmul %386, %388, %cst_570 {dimension_numbers = #tpu.dot_dimension_numbers<[1], [0], [0], [1], [0, 0, 1, 1], [], []>} : vector<8x4xbf16>, vector<4x128xbf16>, vector<8x128xf32> -> vector<8x128xf32>
    %390 = arith.addf %384, %389 : vector<8x128xf32>
    %c0_571 = arith.constant 0 : index
    %c7_572 = arith.constant 7 : index
    %c0_573 = arith.constant 0 : index
    %c0_574 = arith.constant 0 : index
    %391 = vector.load %arg3[%c0_571, %c7_572, %c0_573, %c0_574] : memref<1x9x9x4xbf16, #tpu.memory_space<vmem>>, vector<1x1x8x4xbf16>
    %392 = vector.shape_cast %391 : vector<1x1x8x4xbf16> to vector<8x4xbf16>
    %c2_575 = arith.constant 2 : index
    %c1_576 = arith.constant 1 : index
    %c0_577 = arith.constant 0 : index
    %c0_578 = arith.constant 0 : index
    %393 = vector.load %arg6[%c2_575, %c1_576, %c0_577, %c0_578] : memref<3x3x4x128xbf16, #tpu.memory_space<vmem>>, vector<1x1x4x128xbf16>
    %394 = vector.shape_cast %393 : vector<1x1x4x128xbf16> to vector<4x128xbf16>
    %cst_579 = arith.constant dense<0.000000e+00> : vector<8x128xf32>
    %395 = tpu.matmul %392, %394, %cst_579 {dimension_numbers = #tpu.dot_dimension_numbers<[1], [0], [0], [1], [0, 0, 1, 1], [], []>} : vector<8x4xbf16>, vector<4x128xbf16>, vector<8x128xf32> -> vector<8x128xf32>
    %396 = arith.addf %390, %395 : vector<8x128xf32>
    %c0_580 = arith.constant 0 : index
    %c7_581 = arith.constant 7 : index
    %c1_582 = arith.constant 1 : index
    %c0_583 = arith.constant 0 : index
    %397 = vector.load %arg2[%c0_580, %c7_581, %c1_582, %c0_583] : memref<1x9x9x4xbf16, #tpu.memory_space<vmem>>, vector<1x1x8x4xbf16>
    %398 = vector.shape_cast %397 : vector<1x1x8x4xbf16> to vector<8x4xbf16>
    %c2_584 = arith.constant 2 : index
    %c2_585 = arith.constant 2 : index
    %c0_586 = arith.constant 0 : index
    %c0_587 = arith.constant 0 : index
    %399 = vector.load %arg6[%c2_584, %c2_585, %c0_586, %c0_587] : memref<3x3x4x128xbf16, #tpu.memory_space<vmem>>, vector<1x1x4x128xbf16>
    %400 = vector.shape_cast %399 : vector<1x1x4x128xbf16> to vector<4x128xbf16>
    %cst_588 = arith.constant dense<0.000000e+00> : vector<8x128xf32>
    %401 = tpu.matmul %398, %400, %cst_588 {dimension_numbers = #tpu.dot_dimension_numbers<[1], [0], [0], [1], [0, 0, 1, 1], [], []>} : vector<8x4xbf16>, vector<4x128xbf16>, vector<8x128xf32> -> vector<8x128xf32>
    %402 = arith.addf %396, %401 : vector<8x128xf32>
    %c0_589 = arith.constant 0 : index
    %c6_590 = arith.constant 6 : index
    %c0_591 = arith.constant 0 : index
    %c0_592 = arith.constant 0 : index
    %403 = vector.load %arg7[%c0_589, %c6_590, %c0_591, %c0_592] : memref<1x8x8x128xf32, #tpu.memory_space<vmem>>, vector<1x1x8x128xf32>
    %404 = vector.shape_cast %403 : vector<1x1x8x128xf32> to vector<8x128xf32>
    %405 = vector.shape_cast %402 : vector<8x128xf32> to vector<1x1x8x128xf32>
    tpu.vector_store %arg7[%c0_589, %c6_590, %c0_591, %c0_592], %405 {strides = array<i32>} : memref<1x8x8x128xf32, #tpu.memory_space<vmem>>, vector<1x1x8x128xf32>,
    %cst_593 = arith.constant 0.000000e+00 : f32
    %406 = vector.broadcast %cst_593 : f32 to vector<8x128xf32>
    %c0_594 = arith.constant 0 : index
    %c7_595 = arith.constant 7 : index
    %c0_596 = arith.constant 0 : index
    %c0_597 = arith.constant 0 : index
    %407 = vector.load %arg2[%c0_594, %c7_595, %c0_596, %c0_597] : memref<1x9x9x4xbf16, #tpu.memory_space<vmem>>, vector<1x1x8x4xbf16>
    %408 = vector.shape_cast %407 : vector<1x1x8x4xbf16> to vector<8x4xbf16>
    %c0_598 = arith.constant 0 : index
    %c0_599 = arith.constant 0 : index
    %c0_600 = arith.constant 0 : index
    %c0_601 = arith.constant 0 : index
    %409 = vector.load %arg6[%c0_598, %c0_599, %c0_600, %c0_601] : memref<3x3x4x128xbf16, #tpu.memory_space<vmem>>, vector<1x1x4x128xbf16>
    %410 = vector.shape_cast %409 : vector<1x1x4x128xbf16> to vector<4x128xbf16>
    %cst_602 = arith.constant dense<0.000000e+00> : vector<8x128xf32>
    %411 = tpu.matmul %408, %410, %cst_602 {dimension_numbers = #tpu.dot_dimension_numbers<[1], [0], [0], [1], [0, 0, 1, 1], [], []>} : vector<8x4xbf16>, vector<4x128xbf16>, vector<8x128xf32> -> vector<8x128xf32>
    %412 = arith.addf %406, %411 : vector<8x128xf32>
    %c0_603 = arith.constant 0 : index
    %c7_604 = arith.constant 7 : index
    %c0_605 = arith.constant 0 : index
    %c0_606 = arith.constant 0 : index
    %413 = vector.load %arg3[%c0_603, %c7_604, %c0_605, %c0_606] : memref<1x9x9x4xbf16, #tpu.memory_space<vmem>>, vector<1x1x8x4xbf16>
    %414 = vector.shape_cast %413 : vector<1x1x8x4xbf16> to vector<8x4xbf16>
    %c0_607 = arith.constant 0 : index
    %c1_608 = arith.constant 1 : index
    %c0_609 = arith.constant 0 : index
    %c0_610 = arith.constant 0 : index
    %415 = vector.load %arg6[%c0_607, %c1_608, %c0_609, %c0_610] : memref<3x3x4x128xbf16, #tpu.memory_space<vmem>>, vector<1x1x4x128xbf16>
    %416 = vector.shape_cast %415 : vector<1x1x4x128xbf16> to vector<4x128xbf16>
    %cst_611 = arith.constant dense<0.000000e+00> : vector<8x128xf32>
    %417 = tpu.matmul %414, %416, %cst_611 {dimension_numbers = #tpu.dot_dimension_numbers<[1], [0], [0], [1], [0, 0, 1, 1], [], []>} : vector<8x4xbf16>, vector<4x128xbf16>, vector<8x128xf32> -> vector<8x128xf32>
    %418 = arith.addf %412, %417 : vector<8x128xf32>
    %c0_612 = arith.constant 0 : index
    %c7_613 = arith.constant 7 : index
    %c1_614 = arith.constant 1 : index
    %c0_615 = arith.constant 0 : index
    %419 = vector.load %arg2[%c0_612, %c7_613, %c1_614, %c0_615] : memref<1x9x9x4xbf16, #tpu.memory_space<vmem>>, vector<1x1x8x4xbf16>
    %420 = vector.shape_cast %419 : vector<1x1x8x4xbf16> to vector<8x4xbf16>
    %c0_616 = arith.constant 0 : index
    %c2_617 = arith.constant 2 : index
    %c0_618 = arith.constant 0 : index
    %c0_619 = arith.constant 0 : index
    %421 = vector.load %arg6[%c0_616, %c2_617, %c0_618, %c0_619] : memref<3x3x4x128xbf16, #tpu.memory_space<vmem>>, vector<1x1x4x128xbf16>
    %422 = vector.shape_cast %421 : vector<1x1x4x128xbf16> to vector<4x128xbf16>
    %cst_620 = arith.constant dense<0.000000e+00> : vector<8x128xf32>
    %423 = tpu.matmul %420, %422, %cst_620 {dimension_numbers = #tpu.dot_dimension_numbers<[1], [0], [0], [1], [0, 0, 1, 1], [], []>} : vector<8x4xbf16>, vector<4x128xbf16>, vector<8x128xf32> -> vector<8x128xf32>
    %424 = arith.addf %418, %423 : vector<8x128xf32>
    %c0_621 = arith.constant 0 : index
    %c7_622 = arith.constant 7 : index
    %c0_623 = arith.constant 0 : index
    %c0_624 = arith.constant 0 : index
    %425 = vector.load %arg4[%c0_621, %c7_622, %c0_623, %c0_624] : memref<1x9x9x4xbf16, #tpu.memory_space<vmem>>, vector<1x1x8x4xbf16>
    %426 = vector.shape_cast %425 : vector<1x1x8x4xbf16> to vector<8x4xbf16>
    %c1_625 = arith.constant 1 : index
    %c0_626 = arith.constant 0 : index
    %c0_627 = arith.constant 0 : index
    %c0_628 = arith.constant 0 : index
    %427 = vector.load %arg6[%c1_625, %c0_626, %c0_627, %c0_628] : memref<3x3x4x128xbf16, #tpu.memory_space<vmem>>, vector<1x1x4x128xbf16>
    %428 = vector.shape_cast %427 : vector<1x1x4x128xbf16> to vector<4x128xbf16>
    %cst_629 = arith.constant dense<0.000000e+00> : vector<8x128xf32>
    %429 = tpu.matmul %426, %428, %cst_629 {dimension_numbers = #tpu.dot_dimension_numbers<[1], [0], [0], [1], [0, 0, 1, 1], [], []>} : vector<8x4xbf16>, vector<4x128xbf16>, vector<8x128xf32> -> vector<8x128xf32>
    %430 = arith.addf %424, %429 : vector<8x128xf32>
    %c0_630 = arith.constant 0 : index
    %c7_631 = arith.constant 7 : index
    %c0_632 = arith.constant 0 : index
    %c0_633 = arith.constant 0 : index
    %431 = vector.load %arg5[%c0_630, %c7_631, %c0_632, %c0_633] : memref<1x9x9x4xbf16, #tpu.memory_space<vmem>>, vector<1x1x8x4xbf16>
    %432 = vector.shape_cast %431 : vector<1x1x8x4xbf16> to vector<8x4xbf16>
    %c1_634 = arith.constant 1 : index
    %c1_635 = arith.constant 1 : index
    %c0_636 = arith.constant 0 : index
    %c0_637 = arith.constant 0 : index
    %433 = vector.load %arg6[%c1_634, %c1_635, %c0_636, %c0_637] : memref<3x3x4x128xbf16, #tpu.memory_space<vmem>>, vector<1x1x4x128xbf16>
    %434 = vector.shape_cast %433 : vector<1x1x4x128xbf16> to vector<4x128xbf16>
    %cst_638 = arith.constant dense<0.000000e+00> : vector<8x128xf32>
    %435 = tpu.matmul %432, %434, %cst_638 {dimension_numbers = #tpu.dot_dimension_numbers<[1], [0], [0], [1], [0, 0, 1, 1], [], []>} : vector<8x4xbf16>, vector<4x128xbf16>, vector<8x128xf32> -> vector<8x128xf32>
    %436 = arith.addf %430, %435 : vector<8x128xf32>
    %c0_639 = arith.constant 0 : index
    %c7_640 = arith.constant 7 : index
    %c1_641 = arith.constant 1 : index
    %c0_642 = arith.constant 0 : index
    %437 = vector.load %arg4[%c0_639, %c7_640, %c1_641, %c0_642] : memref<1x9x9x4xbf16, #tpu.memory_space<vmem>>, vector<1x1x8x4xbf16>
    %438 = vector.shape_cast %437 : vector<1x1x8x4xbf16> to vector<8x4xbf16>
    %c1_643 = arith.constant 1 : index
    %c2_644 = arith.constant 2 : index
    %c0_645 = arith.constant 0 : index
    %c0_646 = arith.constant 0 : index
    %439 = vector.load %arg6[%c1_643, %c2_644, %c0_645, %c0_646] : memref<3x3x4x128xbf16, #tpu.memory_space<vmem>>, vector<1x1x4x128xbf16>
    %440 = vector.shape_cast %439 : vector<1x1x4x128xbf16> to vector<4x128xbf16>
    %cst_647 = arith.constant dense<0.000000e+00> : vector<8x128xf32>
    %441 = tpu.matmul %438, %440, %cst_647 {dimension_numbers = #tpu.dot_dimension_numbers<[1], [0], [0], [1], [0, 0, 1, 1], [], []>} : vector<8x4xbf16>, vector<4x128xbf16>, vector<8x128xf32> -> vector<8x128xf32>
    %442 = arith.addf %436, %441 : vector<8x128xf32>
    %c0_648 = arith.constant 0 : index
    %c8 = arith.constant 8 : index
    %c0_649 = arith.constant 0 : index
    %c0_650 = arith.constant 0 : index
    %443 = vector.load %arg2[%c0_648, %c8, %c0_649, %c0_650] : memref<1x9x9x4xbf16, #tpu.memory_space<vmem>>, vector<1x1x8x4xbf16>
    %444 = vector.shape_cast %443 : vector<1x1x8x4xbf16> to vector<8x4xbf16>
    %c2_651 = arith.constant 2 : index
    %c0_652 = arith.constant 0 : index
    %c0_653 = arith.constant 0 : index
    %c0_654 = arith.constant 0 : index
    %445 = vector.load %arg6[%c2_651, %c0_652, %c0_653, %c0_654] : memref<3x3x4x128xbf16, #tpu.memory_space<vmem>>, vector<1x1x4x128xbf16>
    %446 = vector.shape_cast %445 : vector<1x1x4x128xbf16> to vector<4x128xbf16>
    %cst_655 = arith.constant dense<0.000000e+00> : vector<8x128xf32>
    %447 = tpu.matmul %444, %446, %cst_655 {dimension_numbers = #tpu.dot_dimension_numbers<[1], [0], [0], [1], [0, 0, 1, 1], [], []>} : vector<8x4xbf16>, vector<4x128xbf16>, vector<8x128xf32> -> vector<8x128xf32>
    %448 = arith.addf %442, %447 : vector<8x128xf32>
    %c0_656 = arith.constant 0 : index
    %c8_657 = arith.constant 8 : index
    %c0_658 = arith.constant 0 : index
    %c0_659 = arith.constant 0 : index
    %449 = vector.load %arg3[%c0_656, %c8_657, %c0_658, %c0_659] : memref<1x9x9x4xbf16, #tpu.memory_space<vmem>>, vector<1x1x8x4xbf16>
    %450 = vector.shape_cast %449 : vector<1x1x8x4xbf16> to vector<8x4xbf16>
    %c2_660 = arith.constant 2 : index
    %c1_661 = arith.constant 1 : index
    %c0_662 = arith.constant 0 : index
    %c0_663 = arith.constant 0 : index
    %451 = vector.load %arg6[%c2_660, %c1_661, %c0_662, %c0_663] : memref<3x3x4x128xbf16, #tpu.memory_space<vmem>>, vector<1x1x4x128xbf16>
    %452 = vector.shape_cast %451 : vector<1x1x4x128xbf16> to vector<4x128xbf16>
    %cst_664 = arith.constant dense<0.000000e+00> : vector<8x128xf32>
    %453 = tpu.matmul %450, %452, %cst_664 {dimension_numbers = #tpu.dot_dimension_numbers<[1], [0], [0], [1], [0, 0, 1, 1], [], []>} : vector<8x4xbf16>, vector<4x128xbf16>, vector<8x128xf32> -> vector<8x128xf32>
    %454 = arith.addf %448, %453 : vector<8x128xf32>
    %c0_665 = arith.constant 0 : index
    %c8_666 = arith.constant 8 : index
    %c1_667 = arith.constant 1 : index
    %c0_668 = arith.constant 0 : index
    %455 = vector.load %arg2[%c0_665, %c8_666, %c1_667, %c0_668] : memref<1x9x9x4xbf16, #tpu.memory_space<vmem>>, vector<1x1x8x4xbf16>
    %456 = vector.shape_cast %455 : vector<1x1x8x4xbf16> to vector<8x4xbf16>
    %c2_669 = arith.constant 2 : index
    %c2_670 = arith.constant 2 : index
    %c0_671 = arith.constant 0 : index
    %c0_672 = arith.constant 0 : index
    %457 = vector.load %arg6[%c2_669, %c2_670, %c0_671, %c0_672] : memref<3x3x4x128xbf16, #tpu.memory_space<vmem>>, vector<1x1x4x128xbf16>
    %458 = vector.shape_cast %457 : vector<1x1x4x128xbf16> to vector<4x128xbf16>
    %cst_673 = arith.constant dense<0.000000e+00> : vector<8x128xf32>
    %459 = tpu.matmul %456, %458, %cst_673 {dimension_numbers = #tpu.dot_dimension_numbers<[1], [0], [0], [1], [0, 0, 1, 1], [], []>} : vector<8x4xbf16>, vector<4x128xbf16>, vector<8x128xf32> -> vector<8x128xf32>
    %460 = arith.addf %454, %459 : vector<8x128xf32>
    %c0_674 = arith.constant 0 : index
    %c7_675 = arith.constant 7 : index
    %c0_676 = arith.constant 0 : index
    %c0_677 = arith.constant 0 : index
    %461 = vector.load %arg7[%c0_674, %c7_675, %c0_676, %c0_677] : memref<1x8x8x128xf32, #tpu.memory_space<vmem>>, vector<1x1x8x128xf32>
    %462 = vector.shape_cast %461 : vector<1x1x8x128xf32> to vector<8x128xf32>
    %463 = vector.shape_cast %460 : vector<8x128xf32> to vector<1x1x8x128xf32>
    tpu.vector_store %arg7[%c0_674, %c7_675, %c0_676, %c0_677], %463 {strides = array<i32>} : memref<1x8x8x128xf32, #tpu.memory_space<vmem>>, vector<1x1x8x128xf32>,
    return
  }
  func.func @transform_0(%arg0: i32, %arg1: i32) -> (i32, i32, i32, i32) {
    %c0_i32 = arith.constant 0 : i32
    %c0_i32_0 = arith.constant 0 : i32
    %c0_i32_1 = arith.constant 0 : i32
    %c0_i32_2 = arith.constant 0 : i32
    return %arg0, %c0_i32, %c0_i32_0, %c0_i32_1 : i32, i32, i32, i32
  }
  func.func @transform_1(%arg0: i32, %arg1: i32) -> (i32, i32, i32, i32) {
    %c0_i32 = arith.constant 0 : i32
    %c0_i32_0 = arith.constant 0 : i32
    %c0_i32_1 = arith.constant 0 : i32
    %c0_i32_2 = arith.constant 0 : i32
    return %arg0, %c0_i32, %c0_i32_0, %c0_i32_1 : i32, i32, i32, i32
  }
  func.func @transform_2(%arg0: i32, %arg1: i32) -> (i32, i32, i32, i32) {
    %c0_i32 = arith.constant 0 : i32
    %c0_i32_0 = arith.constant 0 : i32
    %c0_i32_1 = arith.constant 0 : i32
    %c0_i32_2 = arith.constant 0 : i32
    return %arg0, %c0_i32, %c0_i32_0, %c0_i32_1 : i32, i32, i32, i32
  }
  func.func @transform_3(%arg0: i32, %arg1: i32) -> (i32, i32, i32, i32) {
    %c0_i32 = arith.constant 0 : i32
    %c0_i32_0 = arith.constant 0 : i32
    %c0_i32_1 = arith.constant 0 : i32
    %c0_i32_2 = arith.constant 0 : i32
    return %arg0, %c0_i32, %c0_i32_0, %c0_i32_1 : i32, i32, i32, i32
  }
  func.func @transform_4(%arg0: i32, %arg1: i32) -> (i32, i32, i32, i32) {
    %c0_i32 = arith.constant 0 : i32
    %c0_i32_0 = arith.constant 0 : i32
    %c0_i32_1 = arith.constant 0 : i32
    %c0_i32_2 = arith.constant 0 : i32
    return %c0_i32, %c0_i32_0, %c0_i32_1, %arg1 : i32, i32, i32, i32
  }
  func.func @transform_5(%arg0: i32, %arg1: i32) -> (i32, i32, i32, i32) {
    %c0_i32 = arith.constant 0 : i32
    %c0_i32_0 = arith.constant 0 : i32
    %c0_i32_1 = arith.constant 0 : i32
    return %arg0, %c0_i32, %c0_i32_0, %arg1 : i32, i32, i32, i32
  }
}

</mosaic_0001>

<bundles_post_ra>
// kernel: conv3x3_s2_p1.1
= control target key start
LH: loop header
LB: loop body
LE: loop exit
PB: predicated region body
PF: predicated region fallthrough
CT: control target
= control target key end

     0   :  { %s5540_s18 = smov 0   ;;  %s5542_s19 = smov 0   ;;  %s6258_s0 = inlined_call_operand.vmem [shape: bf16[2,9,9,4], index: 0, kind: input, shape index: {}]   ;;  %s6259_s1 = inlined_call_operand.vmem [shape: bf16[2,9,9,4], index: 1, kind: input, shape index: {}]   ;;  %s6260_s2 = inlined_call_operand.vmem [shape: bf16[2,9,9,4], index: 2, kind: input, shape index: {}]   ;;  %s6261_s3 = inlined_call_operand.vmem [shape: bf16[2,9,9,4], index: 3, kind: input, shape index: {}]   ;;  %s6262_s4 = inlined_call_operand.vmem [shape: bf16[3,3,4,128], index: 4, kind: input, shape index: {}]   ;;  %s6263_s5 = inlined_call_operand.vmem [shape: f32[2,8,8,128], index: 5, kind: output, shape index: {}]  }
   0x1   :  { %s5544_s20 = smov 0  }
   0x2 LB: > { %s27_s21 = sadd.s32 1, %s5502_s19  ;;  %p4336_p0 = scmp.ge.s32.totalorder %s5506_s20, 1  ;;  %s5506_s20 = sphi %s5544_s20, %s15_s20   ;;  %s5502_s19 = sphi %s5542_s19, %s6265_s19   ;;  %s5498_s18 = sphi %s5540_s18, %s6264_s18  }
   0x3   : > { %p29_p1 = scmp.ge.s32.totalorder %s27_s21, 2  ;;  %p240_p2 = scmp.lt.s32.totalorder %s5506_s20, 3 }
   0x5   : > { %s6267_s21 = smov (%p29_p1, %s27_s21), 0  ;;  %p241_p3 = pnand %p4336_p0, %p240_p2 }
   0x6   : > { %v4343_v0 = vld [vmem:[%s6262_s4 + $0x2] sm:$0x3] (!%p241_p3)  ;;  %vm332_vm0 = vcmask (!%p241_p3), 1041408   ;;  %v5508_v2 = vmov (!%p241_p3), 0.0   ;;  %p290_p4 = scmp.lt.s32.totalorder (!%p241_p3), %s5498_s18, 1  ;;  %vm5509_vm1 = vmmov (!%p241_p3), 0  }
   0x7   : > { %244 = sbr.rel (%p241_p3) target bundleno = 642 (0x282), region = 40  ;;  %v4369_v1 = vld [vmem:[%s6262_s4 + $0x2] sm:$0x3] (!%p241_p3)  ;;  %4745 = vmatprep.subr.bf16.mxu0 (!%p241_p3), %v5508_v2  ;;  %4799 = vmatprep.subr.bf16.mxu1 (!%p241_p3), %v5508_v2  ;;  %v334_v3 = vsel (!%p241_p3), %vm332_vm0, %v4343_v0, 0  ;;  %v324_v5 = vld [vmem:[%s6262_s4] sm:$0x3] (!%p241_p3) }
   0x8   : > { %v822_v4 = vsel (!%p241_p3), %vm332_vm0, %v4369_v1, 0  ;;  %4746 = vmatpush3.bf16.msra.mxu0 (!%p241_p3), %v334_v3  ;;  %4747 = vmatprep.mubr.msk.bf16.mxu0 (!%p241_p3), %vm5509_vm1, %v5508_v2  ;;  %v815_v6 = vld [vmem:[%s6262_s4] sm:$0x3] (!%p241_p3)  ;;  %vm328_vm2 = vcmask (!%p241_p3), 31744   ;;  %v380_v7 = vsel (!%p241_p3), %vm332_vm0, %v324_v5, 0 }
   0x9   : > { %4800 = vmatpush3.bf16.msra.mxu1 (!%p241_p3), %v822_v4  ;;  %4751 = vmatprep.subr.bf16.mxu0 (!%p241_p3), %v5508_v2  ;;  %v868_v8 = vsel (!%p241_p3), %vm332_vm0, %v815_v6, 0  ;;  %v4346_v11 = vld [vmem:[%s6262_s4 + $0x4] sm:$0x3] (!%p241_p3)  ;;  %v4349_v25 = vld [vmem:[%s6262_s4 + $0x6] sm:$0x3] (!%p241_p3) }
   0xa   : > { %4801 = vmatprep.mubr.msk.bf16.mxu1 (!%p241_p3), %vm5509_vm1, %v5508_v2  ;;  %4805 = vmatprep.subr.bf16.mxu1 (!%p241_p3), %v5508_v2  ;;  %v4374_v12 = vld [vmem:[%s6262_s4 + $0x4] sm:$0x3] (!%p241_p3)  ;;  %v442_v17 = vsel (!%p241_p3), %vm332_vm0, %v4346_v11, 0  ;;  %v4378_v26 = vld [vmem:[%s6262_s4 + $0x6] sm:$0x3] (!%p241_p3)  ;;  %v492_v29 = vsel (!%p241_p3), %vm332_vm0, %v4349_v25, 0 }
   0xb   : > { %v929_v18 = vsel (!%p241_p3), %vm332_vm0, %v4374_v12, 0  ;;  %v979_v30 = vsel (!%p241_p3), %vm332_vm0, %v4378_v26, 0  ;;  %v4351_v31 = vld [vmem:[%s6262_s4 + $0x8] sm:$0x3] (!%p241_p3)  ;;  %v4353_v37 = vld [vmem:[%s6262_s4 + $0xa] sm:$0x3] (!%p241_p3) }
   0xc   : > { %v4381_v32 = vld [vmem:[%s6262_s4 + $0x8] sm:$0x3] (!%p241_p3)  ;;  %v542_v35 = vsel (!%p241_p3), %vm332_vm0, %v4351_v31, 0  ;;  %v4385_v38 = vld [vmem:[%s6262_s4 + $0xa] sm:$0x3] (!%p241_p3)  ;;  %v605_v43 = vsel (!%p241_p3), %vm332_vm0, %v4353_v37, 0 }
   0xd   : > { %v1029_v36 = vsel (!%p241_p3), %vm332_vm0, %v4381_v32, 0  ;;  %v1091_v44 = vsel (!%p241_p3), %vm332_vm0, %v4385_v38, 0  ;;  %v4357_v51 = vld [vmem:[%s6262_s4 + $0xc] sm:$0x3] (!%p241_p3)  ;;  %v4360_v57 = vld [vmem:[%s6262_s4 + $0xe] sm:$0x3] (!%p241_p3) }
   0xe   : > { %s6269_s18 = smov (!%p290_p4, %s5498_s18), 1  ;;  %v4389_v52 = vld [vmem:[%s6262_s4 + $0xc] sm:$0x3]  ;;  %v656_v55 = vsel %vm332_vm0, %v4357_v51, 0  ;;  %v4392_v58 = vld [vmem:[%s6262_s4 + $0xe] sm:$0x3] }
   0xf   : > { %s5583_s30 = smul.u32 72, %s6269_s18  ;;  %v1141_v56 = vsel %vm332_vm0, %v4389_v52, 0  ;;  %v707_v61 = vsel %vm332_vm0, %v4360_v57, 0  ;;  %v1191_v62 = vsel %vm332_vm0, %v4392_v58, 0  ;;  %v4364_v63 = vld [vmem:[%s6262_s4 + $0x10] sm:$0x3] }
  0x10   : > { %v4396_v0 = vld [vmem:[%s6262_s4 + $0x10] sm:$0x3]  ;;  %v770_v6 = vsel %vm332_vm0, %v4364_v63, 0  ;;  %v4407_v26 = vld [vmem:[%s6262_s4 + $0x4] sm:$0x3]  ;;  %s4600_s23 = sshll.u32 %s6269_s18, 6 }
  0x11   : > { %s5589_s8 = scalar_lea.vmem %s6259_s1, %s5583_s30  ;;  %s5597_s11 = scalar_lea.vmem %s6258_s0, %s5583_s30  ;;  %v1413_v32 = vsel %vm332_vm0, %v4407_v26, 0  ;;  %v4418_v52 = vld [vmem:[%s6262_s4 + $0xa] sm:$0x3] }
  0x12   : > { %v325_v9 = vld [vmem:[%s5589_s8] sm:$0xf]  ;;  %v4368_v10 = vld [vmem:[%s5589_s8 + $0x8] sm:$0xf]  ;;  %s5610_s14 = scalar_lea.vmem %s6260_s2, %s5583_s30  ;;  %s5673_s10 = scalar_lea.vmem %s6261_s3, %s5583_s30  ;;  %v4388_v60 = vld [vmem:[%s5597_s11 + $0x10] sm:$0xf] }
  0x13   : > { %4748 = vmatmul.mubr.msk.bf16.vlgmr.msra.gmra.mrb[0].mxu0 %vm328_vm2, %v325_v9  ;;  %4802 = vmatmul.mubr.msk.bf16.vlgmr.msra.gmra.mrb[0].mxu1 %vm328_vm2, %v4368_v10  ;;  %v5460_v13 = vld [vmem:[%s5597_s11] sm:$0x1f]   ;;  %v5461_v14 = vld [vmem:[%s5597_s11 + $0x8] sm:$0x1f]   ;;  %v5465_v3 = vld [vmem:[%s5597_s11 + $0x10] sm:$0x1f]   ;;  %s6087_s26 = scalar_lea.vmem %s6263_s5, %s4600_s23 }
  0x14   : > { %4752 = vmatpush3.bf16.msra.mxu0 %v380_v7  ;;  %4806 = vmatpush3.bf16.msra.mxu1 %v868_v8  ;;  %v323_v15 = vld [vmem:[%s5597_s11] sm:$0xf]  ;;  %v4367_v16 = vld [vmem:[%s5597_s11 + $0x8] sm:$0xf]  ;;  %v434_v19 = vshll.u32 %v5460_v13, 16  ;;  %v921_v20 = vshll.u32 %v5461_v14, 16 }
  0x15   : > { %4753 = vmatprep.mubr.msk.bf16.mxu0 %vm5509_vm1, %v5508_v2  ;;  %4757 = vmatprep.subr.bf16.mxu0 %v5508_v2  ;;  %v432_v21 = vshrl.u32 %v5460_v13, 16  ;;  %v919_v23 = vshrl.u32 %v5461_v14, 16  ;;  %v485_v33 = vld [vmem:[%s5610_s14] sm:$0xf]  ;;  %v4377_v34 = vld [vmem:[%s5610_s14 + $0x8] sm:$0xf] }
  0x16   : > { %4807 = vmatprep.mubr.msk.bf16.mxu1 %vm5509_vm1, %v5508_v2  ;;  %4811 = vmatprep.subr.bf16.mxu1 %v5508_v2  ;;  %v436_v22 = vrot.slane %v434_v19, 1  ;;  %v923_v24 = vrot.slane %v921_v20, 1  ;;  %v5462_v39 = vld [vmem:[%s5610_s14] sm:$0x1f]   ;;  %v5463_v40 = vld [vmem:[%s5610_s14 + $0x8] sm:$0x1f]  }
  0x17   : > { %v535_v41 = vld [vmem:[%s5673_s10] sm:$0xf]  ;;  %v4380_v42 = vld [vmem:[%s5673_s10 + $0x8] sm:$0xf]  ;;  %v597_v45 = vshll.u32 %v5462_v39, 16  ;;  %v1083_v46 = vshll.u32 %v5463_v40, 16 }
  0x18   : > { %v437_v27 = vor.u32 %v436_v22, %v432_v21  ;;  %v924_v28 = vor.u32 %v923_v24, %v919_v23  ;;  %v595_v47 = vshrl.u32 %v5462_v39, 16  ;;  %v1081_v49 = vshrl.u32 %v5463_v40, 16  ;;  %v4356_v59 = vld [vmem:[%s5597_s11 + $0x8] sm:$0xf]  ;;  %v4391_v5 = vld [vmem:[%s5589_s8 + $0x10] sm:$0xf] }
  0x19   : > { %v599_v48 = vrot.slane %v597_v45, 1  ;;  %v1085_v50 = vrot.slane %v1083_v46, 1  ;;  %v5464_v1 = vld [vmem:[%s5597_s11 + $0x8] sm:$0x1f]   ;;  %v1253_v7 = vsel %vm332_vm0, %v4396_v0, 0  ;;  %v1245_v9 = vshll.u32 %v5465_v3, 16 }
  0x1a   : > { %v4359_v4 = vld [vmem:[%s5589_s8 + $0x8] sm:$0xf]  ;;  %v762_v8 = vshll.u32 %v5464_v1, 16  ;;  %v760_v10 = vshrl.u32 %v5464_v1, 16  ;;  %v1243_v12 = vshrl.u32 %v5465_v3, 16  ;;  %v1575_v58 = vsel %vm332_vm0, %v4418_v52, 0 }
  0x1b   : > { %v600_v53 = vor.u32 %v599_v48, %v595_v47  ;;  %v1086_v54 = vor.u32 %v1085_v50, %v1081_v49  ;;  %v1247_v13 = vrot.slane %v1245_v9, 1  ;;  %v4402_v14 = vld [vmem:[%s6262_s4 + $0x2] sm:$0x3]  ;;  %v1299_v20 = vld [vmem:[%s6262_s4] sm:$0x3] }
  0x1c   : > { %v764_v11 = vrot.slane %v762_v8, 1  ;;  %v1783_v21 = vld [vmem:[%s6262_s4] sm:$0x3]  ;;  %v4401_v22 = vld [vmem:[%s5589_s8 + $0x10] sm:$0xf]  ;;  %v1352_v24 = vsel %vm332_vm0, %v1299_v20, 0 }
  0x1d   : > { %v4434_v23 = vld [vmem:[%s5589_s8 + $0x18] sm:$0xf]  ;;  %v1836_v25 = vsel %vm332_vm0, %v1783_v21, 0  ;;  %v4411_v40 = vld [vmem:[%s6262_s4 + $0x6] sm:$0x3] }
  0x1e   : > { %v4433_v31 = vld [vmem:[%s5597_s11 + $0x18] sm:$0xf]  ;;  %v4414_v46 = vld [vmem:[%s6262_s4 + $0x8] sm:$0x3]  ;;  %v4410_v48 = vld [vmem:[%s5610_s14 + $0x10] sm:$0xf] }
  0x1f   : > { %4754 = vmatmul.mubr.msk.bf16.vlgmr.msra.gmra.mrb[0].mxu0 %vm328_vm2, %v323_v15  ;;  %4808 = vmatmul.mubr.msk.bf16.vlgmr.msra.gmra.mrb[0].mxu1 %vm328_vm2, %v4367_v16  ;;  %v4435_v15 = vld [vmem:[%s6262_s4 + $0x2] sm:$0x3]  ;;  %v765_v16 = vor.u32 %v764_v11, %v760_v10  ;;  %v4447_v47 = vld [vmem:[%s6262_s4 + $0x8] sm:$0x3]  ;;  %v4443_v49 = vld [vmem:[%s5610_s14 + $0x18] sm:$0xf] }
  0x20   : > { %4758 = vmatpush3.bf16.msra.mxu0 %v442_v17  ;;  %4812 = vmatpush3.bf16.msra.mxu1 %v929_v18  ;;  %v1248_v17 = vor.u32 %v1247_v13, %v1243_v12  ;;  %v1306_v18 = vsel %vm332_vm0, %v4402_v14, 0  ;;  %v1790_v19 = vsel %vm332_vm0, %v4435_v15, 0  ;;  %v1513_v50 = vsel %vm332_vm0, %v4414_v46, 0  ;;  %v4446_v57 = vld [vmem:[%s5673_s10 + $0x18] sm:$0xf] }
  0x21   : > { %4759 = vmatprep.mubr.msk.bf16.mxu0 %vm5509_vm1, %v5508_v2  ;;  %4763 = vmatprep.subr.bf16.mxu0 %v5508_v2  ;;  %v1997_v51 = vsel %vm332_vm0, %v4447_v47, 0  ;;  %v4422_v3 = vld [vmem:[%s6262_s4 + $0xc] sm:$0x3]  ;;  %v4425_v9 = vld [vmem:[%s6262_s4 + $0xe] sm:$0x3] }
  0x22   : > { %4813 = vmatprep.mubr.msk.bf16.mxu1 %vm5509_vm1, %v5508_v2  ;;  %4817 = vmatprep.subr.bf16.mxu1 %v5508_v2  ;;  %v4458_v10 = vld [vmem:[%s6262_s4 + $0xe] sm:$0x3]  ;;  %v4421_v11 = vld [vmem:[%s5597_s11 + $0x18] sm:$0xf]  ;;  %v4454_v12 = vld [vmem:[%s5597_s11 + $0x20] sm:$0xf] }
  0x23   : > { %v1675_v13 = vsel %vm332_vm0, %v4425_v9, 0  ;;  %v2159_v14 = vsel %vm332_vm0, %v4458_v10, 0  ;;  %v4429_v15 = vld [vmem:[%s6262_s4 + $0x10] sm:$0x3]  ;;  %v4457_v20 = vld [vmem:[%s5589_s8 + $0x20] sm:$0xf] }
  0x24   : > { %v1737_v21 = vsel %vm332_vm0, %v4429_v15, 0  ;;  %v4499_v46 = vld [vmem:[%s5597_s11 + $0x28] sm:$0xf] }
  0x25   : > { %v4512_v9 = vld [vmem:[%s5673_s10 + $0x28] sm:$0xf] }
  0x2b   : > { %4760 = vmatmul.mubr.msk.bf16.vlgmr.msra.gmra.mrb[0].mxu0 %vm328_vm2, %v437_v27  ;;  %4814 = vmatmul.mubr.msk.bf16.vlgmr.msra.gmra.mrb[0].mxu1 %vm328_vm2, %v924_v28  ;;  %v4440_v27 = vld [vmem:[%s6262_s4 + $0x4] sm:$0x3]  ;;  %v5466_v28 = vld [vmem:[%s5597_s11 + $0x10] sm:$0x1f]  }
  0x2c   : > { %4764 = vmatpush3.bf16.msra.mxu0 %v492_v29  ;;  %4818 = vmatpush3.bf16.msra.mxu1 %v979_v30  ;;  %v5467_v29 = vld [vmem:[%s5597_s11 + $0x18] sm:$0x1f]   ;;  %v4400_v30 = vld [vmem:[%s5597_s11 + $0x10] sm:$0xf] }
  0x2d   : > { %4765 = vmatprep.mubr.msk.bf16.mxu0 %vm5509_vm1, %v5508_v2  ;;  %4769 = vmatprep.subr.bf16.mxu0 %v5508_v2  ;;  %v1887_v38 = vshrl.u32 %v5467_v29, 16 }
  0x2e   : > { %4819 = vmatprep.mubr.msk.bf16.mxu1 %vm5509_vm1, %v5508_v2  ;;  %4823 = vmatprep.subr.bf16.mxu1 %v5508_v2 }
  0x37   : > { %4766 = vmatmul.mubr.msk.bf16.vlgmr.msra.gmra.mrb[0].mxu0 %vm328_vm2, %v485_v33  ;;  %4820 = vmatmul.mubr.msk.bf16.vlgmr.msra.gmra.mrb[0].mxu1 %vm328_vm2, %v4377_v34  ;;  %v1897_v33 = vsel %vm332_vm0, %v4440_v27, 0  ;;  %v1405_v34 = vshll.u32 %v5466_v28, 16 }
  0x38   : > { %4770 = vmatpush3.bf16.msra.mxu0 %v542_v35  ;;  %4824 = vmatpush3.bf16.msra.mxu1 %v1029_v36  ;;  %v1889_v35 = vshll.u32 %v5467_v29, 16  ;;  %v1403_v36 = vshrl.u32 %v5466_v28, 16  ;;  %v4468_v29 = vld [vmem:[%s6262_s4 + $0x2] sm:$0x3] }
  0x39   : > { %4771 = vmatprep.mubr.msk.bf16.mxu0 %vm5509_vm1, %v5508_v2  ;;  %4775 = vmatprep.subr.bf16.mxu0 %v5508_v2  ;;  %v1407_v37 = vrot.slane %v1405_v34, 1 }
  0x3a   : > { %4825 = vmatprep.mubr.msk.bf16.mxu1 %vm5509_vm1, %v5508_v2  ;;  %4829 = vmatprep.subr.bf16.mxu1 %v5508_v2  ;;  %v1891_v39 = vrot.slane %v1889_v35, 1  ;;  %v2267_v35 = vld [vmem:[%s6262_s4] sm:$0x3] }
  0x43   : > { %4772 = vmatmul.mubr.msk.bf16.vlgmr.msra.gmra.mrb[0].mxu0 %vm328_vm2, %v535_v41  ;;  %4826 = vmatmul.mubr.msk.bf16.vlgmr.msra.gmra.mrb[0].mxu1 %vm328_vm2, %v4380_v42  ;;  %v4444_v41 = vld [vmem:[%s6262_s4 + $0x6] sm:$0x3]  ;;  %v1408_v42 = vor.u32 %v1407_v37, %v1403_v36  ;;  %v2751_v36 = vld [vmem:[%s6262_s4] sm:$0x3] }
  0x44   : > { %4776 = vmatpush3.bf16.msra.mxu0 %v605_v43  ;;  %4830 = vmatpush3.bf16.msra.mxu1 %v1091_v44  ;;  %v1892_v43 = vor.u32 %v1891_v39, %v1887_v38  ;;  %v1463_v44 = vsel %vm332_vm0, %v4411_v40, 0  ;;  %v1947_v45 = vsel %vm332_vm0, %v4444_v41, 0  ;;  %v4467_v37 = vld [vmem:[%s5589_s8 + $0x20] sm:$0xf]  ;;  %v4500_v38 = vld [vmem:[%s5589_s8 + $0x28] sm:$0xf] }
  0x45   : > { %4777 = vmatprep.mubr.msk.bf16.mxu0 %vm5509_vm1, %v5508_v2  ;;  %4781 = vmatprep.subr.bf16.mxu0 %v5508_v2  ;;  %v2320_v39 = vsel %vm332_vm0, %v2267_v35, 0  ;;  %v2804_v40 = vsel %vm332_vm0, %v2751_v36, 0  ;;  %v4473_v41 = vld [vmem:[%s6262_s4 + $0x4] sm:$0x3]  ;;  %v4523_v35 = vld [vmem:[%s5589_s8 + $0x30] sm:$0xf] }
  0x46   : > { %4831 = vmatprep.mubr.msk.bf16.mxu1 %vm5509_vm1, %v5508_v2  ;;  %4835 = vmatprep.subr.bf16.mxu1 %v5508_v2  ;;  %v2381_v47 = vsel %vm332_vm0, %v4473_v41, 0 }
  0x4f   : > { %4778 = vmatmul.mubr.msk.bf16.vlgmr.msra.gmra.mrb[0].mxu0 %vm328_vm2, %v600_v53  ;;  %4832 = vmatmul.mubr.msk.bf16.vlgmr.msra.gmra.mrb[0].mxu1 %vm328_vm2, %v1086_v54  ;;  %v4451_v53 = vld [vmem:[%s6262_s4 + $0xa] sm:$0x3]  ;;  %v5468_v54 = vld [vmem:[%s5610_s14 + $0x10] sm:$0x1f]  }
  0x50   : > { %4782 = vmatpush3.bf16.msra.mxu0 %v656_v55  ;;  %4836 = vmatpush3.bf16.msra.mxu1 %v1141_v56  ;;  %v5469_v55 = vld [vmem:[%s5610_s14 + $0x18] sm:$0x1f]   ;;  %v4413_v56 = vld [vmem:[%s5673_s10 + $0x10] sm:$0xf] }
  0x51   : > { %4783 = vmatprep.mubr.msk.bf16.mxu0 %vm5509_vm1, %v5508_v2  ;;  %4787 = vmatprep.subr.bf16.mxu0 %v5508_v2  ;;  %v2049_v0 = vshrl.u32 %v5469_v55, 16 }
  0x52   : > { %4837 = vmatprep.mubr.msk.bf16.mxu1 %vm5509_vm1, %v5508_v2  ;;  %4841 = vmatprep.subr.bf16.mxu1 %v5508_v2 }
  0x5b   : > { %4784 = vmatmul.mubr.msk.bf16.vlgmr.msra.gmra.mrb[0].mxu0 %vm328_vm2, %v4356_v59  ;;  %4838 = vmatmul.mubr.msk.bf16.vlgmr.msra.gmra.mrb[0].mxu1 %vm328_vm2, %v4388_v60  ;;  %v2059_v59 = vsel %vm332_vm0, %v4451_v53, 0  ;;  %v1567_v60 = vshll.u32 %v5468_v54, 16 }
  0x5c   : > { %4788 = vmatpush3.bf16.msra.mxu0 %v707_v61  ;;  %4842 = vmatpush3.bf16.msra.mxu1 %v1191_v62  ;;  %v2051_v61 = vshll.u32 %v5469_v55, 16  ;;  %v1565_v62 = vshrl.u32 %v5468_v54, 16  ;;  %v4477_v55 = vld [vmem:[%s6262_s4 + $0x6] sm:$0x3] }
  0x5d   : > { %4789 = vmatprep.mubr.msk.bf16.mxu0 %vm5509_vm1, %v5508_v2  ;;  %4793 = vmatprep.subr.bf16.mxu0 %v5508_v2  ;;  %v1569_v63 = vrot.slane %v1567_v60, 1 }
  0x5e   : > { %4843 = vmatprep.mubr.msk.bf16.mxu1 %vm5509_vm1, %v5508_v2  ;;  %4847 = vmatprep.subr.bf16.mxu1 %v5508_v2  ;;  %v2053_v1 = vrot.slane %v2051_v61, 1  ;;  %v4480_v61 = vld [vmem:[%s6262_s4 + $0x8] sm:$0x3] }
  0x67   : > { %4790 = vmatmul.mubr.msk.bf16.vlgmr.msra.gmra.mrb[0].mxu0 %vm328_vm2, %v4359_v4  ;;  %4844 = vmatmul.mubr.msk.bf16.vlgmr.msra.gmra.mrb[0].mxu1 %vm328_vm2, %v4391_v5  ;;  %v4455_v4 = vld [vmem:[%s6262_s4 + $0xc] sm:$0x3]  ;;  %v1570_v5 = vor.u32 %v1569_v63, %v1565_v62  ;;  %v4513_v62 = vld [vmem:[%s6262_s4 + $0x8] sm:$0x3]  ;;  %v4476_v63 = vld [vmem:[%s5610_s14 + $0x20] sm:$0xf] }
  0x68   : > { %4794 = vmatpush3.bf16.msra.mxu0 %v770_v6  ;;  %4848 = vmatpush3.bf16.msra.mxu1 %v1253_v7  ;;  %v2054_v6 = vor.u32 %v2053_v1, %v2049_v0  ;;  %v1625_v7 = vsel %vm332_vm0, %v4422_v3, 0  ;;  %v2109_v8 = vsel %vm332_vm0, %v4455_v4, 0  ;;  %v4509_v0 = vld [vmem:[%s5610_s14 + $0x28] sm:$0xf]  ;;  %v2481_v1 = vsel %vm332_vm0, %v4480_v61, 0 }
  0x69   : > { %4795 = vmatprep.mubr.msk.bf16.mxu0 %vm5509_vm1, %v5508_v2  ;;  %4849 = vmatprep.mubr.msk.bf16.mxu1 %vm5509_vm1, %v5508_v2  ;;  %v2965_v3 = vsel %vm332_vm0, %v4513_v62, 0  ;;  %v4484_v4 = vld [vmem:[%s6262_s4 + $0xa] sm:$0x3] }
  0x6a   : > { %4853 = vmatprep.subr.bf16.mxu0 %v5508_v2  ;;  %4907 = vmatprep.subr.bf16.mxu1 %v5508_v2  ;;  %v2543_v10 = vsel %vm332_vm0, %v4484_v4, 0  ;;  %v5479_v4 = vld [vmem:[%s5597_s11 + $0x38] sm:$0x1f]  }
  0x73   : > { %4796 = vmatmul.mubr.msk.bf16.vlgmr.msra.gmra.mrb[0].mxu0 %vm328_vm2, %v765_v16  ;;  %4850 = vmatmul.mubr.msk.bf16.vlgmr.msra.gmra.mrb[0].mxu1 %vm328_vm2, %v1248_v17  ;;  %v4462_v16 = vld [vmem:[%s6262_s4 + $0x10] sm:$0x3]  ;;  %v5470_v17 = vld [vmem:[%s5597_s11 + $0x18] sm:$0x1f]  }
  0x74   : > { %4854 = vmatpush3.bf16.msra.mxu0 %v1306_v18  ;;  %4908 = vmatpush3.bf16.msra.mxu1 %v1790_v19  ;;  %v5471_v18 = vld [vmem:[%s5597_s11 + $0x20] sm:$0x1f]   ;;  %v4424_v19 = vld [vmem:[%s5589_s8 + $0x18] sm:$0xf] }
  0x75   : > { %4855 = vmatprep.mubr.msk.bf16.mxu0 %vm5509_vm1, %v5508_v2  ;;  %4859 = vmatprep.subr.bf16.mxu0 %v5508_v2  ;;  %v2211_v27 = vshrl.u32 %v5471_v18, 16 }
  0x76   : > { %4909 = vmatprep.mubr.msk.bf16.mxu1 %vm5509_vm1, %v5508_v2  ;;  %4913 = vmatprep.subr.bf16.mxu1 %v5508_v2 }
  0x7b   : > { %4856 = vmatmul.mubr.msk.bf16.vlgmr.msra.gmra.mrb[4].mxu0 %vm328_vm2, %v4401_v22  ;;  %4910 = vmatmul.mubr.msk.bf16.vlgmr.msra.gmra.mrb[4].mxu1 %vm328_vm2, %v4434_v23  ;;  %v2221_v22 = vsel %vm332_vm0, %v4462_v16, 0  ;;  %v1729_v23 = vshll.u32 %v5470_v17, 16 }
  0x7c   : > { %4860 = vmatpush3.bf16.msra.mxu0 %v1352_v24  ;;  %4914 = vmatpush3.bf16.msra.mxu1 %v1836_v25  ;;  %v2213_v24 = vshll.u32 %v5471_v18, 16  ;;  %v1727_v25 = vshrl.u32 %v5470_v17, 16  ;;  %v4488_v18 = vld [vmem:[%s6262_s4 + $0xc] sm:$0x3] }
  0x7d   : > { %4861 = vmatprep.mubr.msk.bf16.mxu0 %vm5509_vm1, %v5508_v2  ;;  %4865 = vmatprep.subr.bf16.mxu0 %v5508_v2  ;;  %v1731_v26 = vrot.slane %v1729_v23, 1 }
  0x7e   : > { %4915 = vmatprep.mubr.msk.bf16.mxu1 %vm5509_vm1, %v5508_v2  ;;  %4919 = vmatprep.subr.bf16.mxu1 %v5508_v2  ;;  %v2215_v28 = vrot.slane %v2213_v24, 1  ;;  %v4491_v24 = vld [vmem:[%s6262_s4 + $0xe] sm:$0x3] }
  0x87   : > { %4862 = vmatmul.mubr.msk.bf16.vlgmr.msra.gmra.mrb[4].mxu0 %vm328_vm2, %v4400_v30  ;;  %4916 = vmatmul.mubr.msk.bf16.vlgmr.msra.gmra.mrb[4].mxu1 %vm328_vm2, %v4433_v31  ;;  %v4501_v30 = vld [vmem:[%s6262_s4 + $0x2] sm:$0x3]  ;;  %v1732_v31 = vor.u32 %v1731_v26, %v1727_v25  ;;  %v4524_v25 = vld [vmem:[%s6262_s4 + $0xe] sm:$0x3]  ;;  %v4487_v26 = vld [vmem:[%s5597_s11 + $0x28] sm:$0xf] }
  0x88   : > { %4866 = vmatpush3.bf16.msra.mxu0 %v1413_v32  ;;  %4920 = vmatpush3.bf16.msra.mxu1 %v1897_v33  ;;  %v2216_v32 = vor.u32 %v2215_v28, %v2211_v27  ;;  %v2274_v33 = vsel %vm332_vm0, %v4468_v29, 0  ;;  %v2758_v34 = vsel %vm332_vm0, %v4501_v30, 0  ;;  %v4520_v27 = vld [vmem:[%s5597_s11 + $0x30] sm:$0xf]  ;;  %v2643_v28 = vsel %vm332_vm0, %v4491_v24, 0 }
  0x89   : > { %4867 = vmatprep.mubr.msk.bf16.mxu0 %vm5509_vm1, %v5508_v2  ;;  %4871 = vmatprep.subr.bf16.mxu0 %v5508_v2  ;;  %v3127_v29 = vsel %vm332_vm0, %v4524_v25, 0  ;;  %v4495_v30 = vld [vmem:[%s6262_s4 + $0x10] sm:$0x3]  ;;  %v4575_v24 = vld [vmem:[%s5610_s14 + $0x38] sm:$0xf] }
  0x8a   : > { %4921 = vmatprep.mubr.msk.bf16.mxu1 %vm5509_vm1, %v5508_v2  ;;  %4925 = vmatprep.subr.bf16.mxu1 %v5508_v2  ;;  %v2705_v36 = vsel %vm332_vm0, %v4495_v30, 0  ;;  %v5481_v30 = vld [vmem:[%s5610_s14 + $0x38] sm:$0x1f]  }
  0x93   : > { %4868 = vmatmul.mubr.msk.bf16.vlgmr.msra.gmra.mrb[4].mxu0 %vm328_vm2, %v1408_v42  ;;  %4922 = vmatmul.mubr.msk.bf16.vlgmr.msra.gmra.mrb[4].mxu1 %vm328_vm2, %v1892_v43  ;;  %v4506_v42 = vld [vmem:[%s6262_s4 + $0x4] sm:$0x3] }
  0x94   : > { %4872 = vmatpush3.bf16.msra.mxu0 %v1463_v44  ;;  %4926 = vmatpush3.bf16.msra.mxu1 %v1947_v45  ;;  %v5472_v43 = vld [vmem:[%s5597_s11 + $0x20] sm:$0x1f]   ;;  %v5473_v44 = vld [vmem:[%s5597_s11 + $0x28] sm:$0x1f]  }
  0x95   : > { %4873 = vmatprep.mubr.msk.bf16.mxu0 %vm5509_vm1, %v5508_v2  ;;  %4877 = vmatprep.subr.bf16.mxu0 %v5508_v2  ;;  %v4466_v45 = vld [vmem:[%s5597_s11 + $0x20] sm:$0xf]  ;;  %v2855_v53 = vshrl.u32 %v5473_v44, 16 }
  0x96   : > { %4927 = vmatprep.mubr.msk.bf16.mxu1 %vm5509_vm1, %v5508_v2  ;;  %4931 = vmatprep.subr.bf16.mxu1 %v5508_v2 }
  0x9f   : > { %4874 = vmatmul.mubr.msk.bf16.vlgmr.msra.gmra.mrb[4].mxu0 %vm328_vm2, %v4410_v48  ;;  %4928 = vmatmul.mubr.msk.bf16.vlgmr.msra.gmra.mrb[4].mxu1 %vm328_vm2, %v4443_v49  ;;  %v2865_v48 = vsel %vm332_vm0, %v4506_v42, 0  ;;  %v2373_v49 = vshll.u32 %v5472_v43, 16 }
  0xa0   : > { %4878 = vmatpush3.bf16.msra.mxu0 %v1513_v50  ;;  %4932 = vmatpush3.bf16.msra.mxu1 %v1997_v51  ;;  %v2857_v50 = vshll.u32 %v5473_v44, 16  ;;  %v2371_v51 = vshrl.u32 %v5472_v43, 16  ;;  %v4534_v44 = vld [vmem:[%s6262_s4 + $0x2] sm:$0x3] }
  0xa1   : > { %4879 = vmatprep.mubr.msk.bf16.mxu0 %vm5509_vm1, %v5508_v2  ;;  %4883 = vmatprep.subr.bf16.mxu0 %v5508_v2  ;;  %v2375_v52 = vrot.slane %v2373_v49, 1 }
  0xa2   : > { %4933 = vmatprep.mubr.msk.bf16.mxu1 %vm5509_vm1, %v5508_v2  ;;  %4937 = vmatprep.subr.bf16.mxu1 %v5508_v2  ;;  %v2859_v54 = vrot.slane %v2857_v50, 1 }
  0xab   : > { %4880 = vmatmul.mubr.msk.bf16.vlgmr.msra.gmra.mrb[4].mxu0 %vm328_vm2, %v4413_v56  ;;  %4934 = vmatmul.mubr.msk.bf16.vlgmr.msra.gmra.mrb[4].mxu1 %vm328_vm2, %v4446_v57  ;;  %v4510_v56 = vld [vmem:[%s6262_s4 + $0x6] sm:$0x3]  ;;  %v2376_v57 = vor.u32 %v2375_v52, %v2371_v51  ;;  %v3235_v52 = vld [vmem:[%s6262_s4] sm:$0x3] }
  0xac   : > { %4884 = vmatpush3.bf16.msra.mxu0 %v1575_v58  ;;  %4938 = vmatpush3.bf16.msra.mxu1 %v2059_v59  ;;  %v2860_v58 = vor.u32 %v2859_v54, %v2855_v53  ;;  %v2431_v59 = vsel %vm332_vm0, %v4477_v55, 0  ;;  %v2915_v60 = vsel %vm332_vm0, %v4510_v56, 0  ;;  %v3719_v53 = vld [vmem:[%s6262_s4] sm:$0x3]  ;;  %v3288_v62 = vsel %vm332_vm0, %v3235_v52, 0 }
  0xad   : > { %4885 = vmatprep.mubr.msk.bf16.mxu0 %vm5509_vm1, %v5508_v2  ;;  %4889 = vmatprep.subr.bf16.mxu0 %v5508_v2 }
  0xae   : > { %4939 = vmatprep.mubr.msk.bf16.mxu1 %vm5509_vm1, %v5508_v2  ;;  %4943 = vmatprep.subr.bf16.mxu1 %v5508_v2 }
  0xb7   : > { %4886 = vmatmul.mubr.msk.bf16.vlgmr.msra.gmra.mrb[4].mxu0 %vm328_vm2, %v1570_v5  ;;  %4940 = vmatmul.mubr.msk.bf16.vlgmr.msra.gmra.mrb[4].mxu1 %vm328_vm2, %v2054_v6  ;;  %v4517_v5 = vld [vmem:[%s6262_s4 + $0xa] sm:$0x3]  ;;  %v5474_v6 = vld [vmem:[%s5610_s14 + $0x20] sm:$0x1f]  }
  0xb8   : > { %4890 = vmatpush3.bf16.msra.mxu0 %v1625_v7  ;;  %4944 = vmatpush3.bf16.msra.mxu1 %v2109_v8  ;;  %v5475_v7 = vld [vmem:[%s5610_s14 + $0x28] sm:$0x1f]   ;;  %v4479_v8 = vld [vmem:[%s5673_s10 + $0x20] sm:$0xf] }
  0xb9   : > { %4891 = vmatprep.mubr.msk.bf16.mxu0 %vm5509_vm1, %v5508_v2  ;;  %4895 = vmatprep.subr.bf16.mxu0 %v5508_v2  ;;  %v3017_v16 = vshrl.u32 %v5475_v7, 16 }
  0xba   : > { %4945 = vmatprep.mubr.msk.bf16.mxu1 %vm5509_vm1, %v5508_v2  ;;  %4949 = vmatprep.subr.bf16.mxu1 %v5508_v2 }
  0xc3   : > { %4892 = vmatmul.mubr.msk.bf16.vlgmr.msra.gmra.mrb[4].mxu0 %vm328_vm2, %v4421_v11  ;;  %4946 = vmatmul.mubr.msk.bf16.vlgmr.msra.gmra.mrb[4].mxu1 %vm328_vm2, %v4454_v12  ;;  %v3027_v11 = vsel %vm332_vm0, %v4517_v5, 0  ;;  %v2535_v12 = vshll.u32 %v5474_v6, 16  ;;  %v4532_v5 = vld [vmem:[%s5597_s11 + $0x30] sm:$0xf] }
  0xc4   : > { %4896 = vmatpush3.bf16.msra.mxu0 %v1675_v13  ;;  %4950 = vmatpush3.bf16.msra.mxu1 %v2159_v14  ;;  %v3019_v13 = vshll.u32 %v5475_v7, 16  ;;  %v2533_v14 = vshrl.u32 %v5474_v6, 16  ;;  %v4565_v6 = vld [vmem:[%s5597_s11 + $0x38] sm:$0xf] }
  0xc5   : > { %4897 = vmatprep.mubr.msk.bf16.mxu0 %vm5509_vm1, %v5508_v2  ;;  %4901 = vmatprep.subr.bf16.mxu0 %v5508_v2  ;;  %v2537_v15 = vrot.slane %v2535_v12, 1 }
  0xc6   : > { %4951 = vmatprep.mubr.msk.bf16.mxu1 %vm5509_vm1, %v5508_v2  ;;  %4955 = vmatprep.subr.bf16.mxu1 %v5508_v2  ;;  %v3021_v17 = vrot.slane %v3019_v13, 1  ;;  %v3823_v13 = vshrl.u32 %v5479_v4, 16 }
  0xcf   : > { %4898 = vmatmul.mubr.msk.bf16.vlgmr.msra.gmra.mrb[4].mxu0 %vm328_vm2, %v4424_v19  ;;  %4952 = vmatmul.mubr.msk.bf16.vlgmr.msra.gmra.mrb[4].mxu1 %vm328_vm2, %v4457_v20  ;;  %v4521_v19 = vld [vmem:[%s6262_s4 + $0xc] sm:$0x3]  ;;  %v2538_v20 = vor.u32 %v2537_v15, %v2533_v14  ;;  %v4543_v15 = vld [vmem:[%s6262_s4 + $0x6] sm:$0x3] }
  0xd0   : > { %4902 = vmatpush3.bf16.msra.mxu0 %v1737_v21  ;;  %4956 = vmatpush3.bf16.msra.mxu1 %v2221_v22  ;;  %v3022_v21 = vor.u32 %v3021_v17, %v3017_v16  ;;  %v2593_v22 = vsel %vm332_vm0, %v4488_v18, 0  ;;  %v3077_v23 = vsel %vm332_vm0, %v4521_v19, 0  ;;  %v4576_v16 = vld [vmem:[%s6262_s4 + $0x6] sm:$0x3]  ;;  %v3399_v19 = vsel %vm332_vm0, %v4543_v15, 0 }
  0xd1   : > { %4903 = vmatprep.mubr.msk.bf16.mxu0 %vm5509_vm1, %v5508_v2  ;;  %4957 = vmatprep.mubr.msk.bf16.mxu1 %vm5509_vm1, %v5508_v2 }
  0xd2   : > { %4961 = vmatprep.subr.bf16.mxu0 %v5508_v2  ;;  %5015 = vmatprep.subr.bf16.mxu1 %v5508_v2 }
  0xdb   : > { %4904 = vmatmul.mubr.msk.bf16.vlgmr.msra.gmra.mrb[4].mxu0 %vm328_vm2, %v1732_v31  ;;  %4958 = vmatmul.mubr.msk.bf16.vlgmr.msra.gmra.mrb[4].mxu1 %vm328_vm2, %v2216_v32  ;;  %v4528_v31 = vld [vmem:[%s6262_s4 + $0x10] sm:$0x3]  ;;  %v5476_v32 = vld [vmem:[%s5597_s11 + $0x28] sm:$0x1f]  }
  0xdc   : > { %4962 = vmatpush3.bf16.msra.mxu0 %v2274_v33  ;;  %5016 = vmatpush3.bf16.msra.mxu1 %v2758_v34  ;;  %v5477_v33 = vld [vmem:[%s5597_s11 + $0x30] sm:$0x1f]   ;;  %v4490_v34 = vld [vmem:[%s5589_s8 + $0x28] sm:$0xf] }
  0xdd   : > { %4963 = vmatprep.mubr.msk.bf16.mxu0 %vm5509_vm1, %v5508_v2  ;;  %4967 = vmatprep.subr.bf16.mxu0 %v5508_v2  ;;  %v3179_v42 = vshrl.u32 %v5477_v33, 16 }
  0xde   : > { %5017 = vmatprep.mubr.msk.bf16.mxu1 %vm5509_vm1, %v5508_v2  ;;  %5021 = vmatprep.subr.bf16.mxu1 %v5508_v2 }
  0xe3   : > { %4964 = vmatmul.mubr.msk.bf16.vlgmr.msra.gmra.mrb[8].mxu0 %vm328_vm2, %v4467_v37  ;;  %5018 = vmatmul.mubr.msk.bf16.vlgmr.msra.gmra.mrb[8].mxu1 %vm328_vm2, %v4500_v38  ;;  %v3189_v37 = vsel %vm332_vm0, %v4528_v31, 0  ;;  %v2697_v38 = vshll.u32 %v5476_v32, 16  ;;  %v4545_v31 = vld [vmem:[%s5673_s10 + $0x30] sm:$0xf] }
  0xe4   : > { %4968 = vmatpush3.bf16.msra.mxu0 %v2320_v39  ;;  %5022 = vmatpush3.bf16.msra.mxu1 %v2804_v40  ;;  %v3181_v39 = vshll.u32 %v5477_v33, 16  ;;  %v2695_v40 = vshrl.u32 %v5476_v32, 16  ;;  %v4578_v32 = vld [vmem:[%s5673_s10 + $0x38] sm:$0xf] }
  0xe5   : > { %4969 = vmatprep.mubr.msk.bf16.mxu0 %vm5509_vm1, %v5508_v2  ;;  %4973 = vmatprep.subr.bf16.mxu0 %v5508_v2  ;;  %v2699_v41 = vrot.slane %v2697_v38, 1 }
  0xe6   : > { %5023 = vmatprep.mubr.msk.bf16.mxu1 %vm5509_vm1, %v5508_v2  ;;  %5027 = vmatprep.subr.bf16.mxu1 %v5508_v2  ;;  %v3183_v43 = vrot.slane %v3181_v39, 1  ;;  %v3985_v39 = vshrl.u32 %v5481_v30, 16 }
  0xef   : > { %4970 = vmatmul.mubr.msk.bf16.vlgmr.msra.gmra.mrb[8].mxu0 %vm328_vm2, %v4466_v45  ;;  %5024 = vmatmul.mubr.msk.bf16.vlgmr.msra.gmra.mrb[8].mxu1 %vm328_vm2, %v4499_v46  ;;  %v4567_v45 = vld [vmem:[%s6262_s4 + $0x2] sm:$0x3]  ;;  %v2700_v46 = vor.u32 %v2699_v41, %v2695_v40  ;;  %v4554_v41 = vld [vmem:[%s6262_s4 + $0xc] sm:$0x3] }
  0xf0   : > { %4974 = vmatpush3.bf16.msra.mxu0 %v2381_v47  ;;  %5028 = vmatpush3.bf16.msra.mxu1 %v2865_v48  ;;  %v3184_v47 = vor.u32 %v3183_v43, %v3179_v42  ;;  %v3242_v48 = vsel %vm332_vm0, %v4534_v44, 0  ;;  %v3726_v49 = vsel %vm332_vm0, %v4567_v45, 0  ;;  %v4587_v42 = vld [vmem:[%s6262_s4 + $0xc] sm:$0x3]  ;;  %v3561_v45 = vsel %vm332_vm0, %v4554_v41, 0 }
  0xf1   : > { %4975 = vmatprep.mubr.msk.bf16.mxu0 %vm5509_vm1, %v5508_v2  ;;  %4979 = vmatprep.subr.bf16.mxu0 %v5508_v2 }
  0xf2   : > { %5029 = vmatprep.mubr.msk.bf16.mxu1 %vm5509_vm1, %v5508_v2  ;;  %5033 = vmatprep.subr.bf16.mxu1 %v5508_v2 }
  0xfb   : > { %4976 = vmatmul.mubr.msk.bf16.vlgmr.msra.gmra.mrb[8].mxu0 %vm328_vm2, %v2376_v57  ;;  %5030 = vmatmul.mubr.msk.bf16.vlgmr.msra.gmra.mrb[8].mxu1 %vm328_vm2, %v2860_v58  ;;  %v4533_v58 = vld [vmem:[%s5589_s8 + $0x30] sm:$0xf] }
  0xfc   : > { %4980 = vmatpush3.bf16.msra.mxu0 %v2431_v59  ;;  %5034 = vmatpush3.bf16.msra.mxu1 %v2915_v60  ;;  %v4566_v59 = vld [vmem:[%s5589_s8 + $0x38] sm:$0xf] }
  0xfd   : > { %4981 = vmatprep.mubr.msk.bf16.mxu0 %vm5509_vm1, %v5508_v2  ;;  %4985 = vmatprep.subr.bf16.mxu0 %v5508_v2 }
  0xfe   : > { %5035 = vmatprep.mubr.msk.bf16.mxu1 %vm5509_vm1, %v5508_v2  ;;  %5039 = vmatprep.subr.bf16.mxu1 %v5508_v2 }
 0x107   : > { %4982 = vmatmul.mubr.msk.bf16.vlgmr.msra.gmra.mrb[8].mxu0 %vm328_vm2, %v4476_v63  ;;  %5036 = vmatmul.mubr.msk.bf16.vlgmr.msra.gmra.mrb[8].mxu1 %vm328_vm2, %v4509_v0  ;;  %v3772_v63 = vsel %vm332_vm0, %v3719_v53, 0  ;;  %v4539_v0 = vld [vmem:[%s6262_s4 + $0x4] sm:$0x3]  ;;  %v4561_v53 = vld [vmem:[%s6262_s4 + $0x10] sm:$0x3] }
 0x108   : > { %4986 = vmatpush3.bf16.msra.mxu0 %v2481_v1  ;;  %5040 = vmatpush3.bf16.msra.mxu1 %v2965_v3  ;;  %v4572_v1 = vld [vmem:[%s6262_s4 + $0x4] sm:$0x3]  ;;  %v5478_v3 = vld [vmem:[%s5597_s11 + $0x30] sm:$0x1f]   ;;  %v3349_v7 = vsel %vm332_vm0, %v4539_v0, 0 }
 0x109   : > { %4987 = vmatprep.mubr.msk.bf16.mxu0 %vm5509_vm1, %v5508_v2  ;;  %4991 = vmatprep.subr.bf16.mxu0 %v5508_v2 }
 0x10a   : > { %5041 = vmatprep.mubr.msk.bf16.mxu1 %vm5509_vm1, %v5508_v2  ;;  %5045 = vmatprep.subr.bf16.mxu1 %v5508_v2 }
 0x113   : > { %4988 = vmatmul.mubr.msk.bf16.vlgmr.msra.gmra.mrb[8].mxu0 %vm328_vm2, %v4479_v8  ;;  %5042 = vmatmul.mubr.msk.bf16.vlgmr.msra.gmra.mrb[8].mxu1 %vm328_vm2, %v4512_v9  ;;  %v3833_v8 = vsel %vm332_vm0, %v4572_v1, 0  ;;  %v3341_v9 = vshll.u32 %v5478_v3, 16 }
 0x114   : > { %4992 = vmatpush3.bf16.msra.mxu0 %v2543_v10  ;;  %5046 = vmatpush3.bf16.msra.mxu1 %v3027_v11  ;;  %v3825_v10 = vshll.u32 %v5479_v4, 16  ;;  %v3339_v11 = vshrl.u32 %v5478_v3, 16 }
 0x115   : > { %4993 = vmatprep.mubr.msk.bf16.mxu0 %vm5509_vm1, %v5508_v2  ;;  %4997 = vmatprep.subr.bf16.mxu0 %v5508_v2  ;;  %v3343_v12 = vrot.slane %v3341_v9, 1 }
 0x116   : > { %5047 = vmatprep.mubr.msk.bf16.mxu1 %vm5509_vm1, %v5508_v2  ;;  %5051 = vmatprep.subr.bf16.mxu1 %v5508_v2  ;;  %v3827_v14 = vrot.slane %v3825_v10, 1 }
 0x117   : > { %v3344_v17 = vor.u32 %v3343_v12, %v3339_v11 }
 0x118   : > { %v3828_v18 = vor.u32 %v3827_v14, %v3823_v13 }
 0x11f   : > { %4994 = vmatmul.mubr.msk.bf16.vlgmr.msra.gmra.mrb[8].mxu0 %vm328_vm2, %v2538_v20  ;;  %5048 = vmatmul.mubr.msk.bf16.vlgmr.msra.gmra.mrb[8].mxu1 %vm328_vm2, %v3022_v21  ;;  %v3883_v20 = vsel %vm332_vm0, %v4576_v16, 0  ;;  %v4546_v21 = vld [vmem:[%s6262_s4 + $0x8] sm:$0x3] }
 0x120   : > { %4998 = vmatpush3.bf16.msra.mxu0 %v2593_v22  ;;  %5052 = vmatpush3.bf16.msra.mxu1 %v3077_v23  ;;  %v4579_v22 = vld [vmem:[%s6262_s4 + $0x8] sm:$0x3]  ;;  %v4542_v23 = vld [vmem:[%s5610_s14 + $0x30] sm:$0xf]  ;;  %v3449_v25 = vsel %vm332_vm0, %v4546_v21, 0 }
 0x121   : > { %4999 = vmatprep.mubr.msk.bf16.mxu0 %vm5509_vm1, %v5508_v2  ;;  %5003 = vmatprep.subr.bf16.mxu0 %v5508_v2 }
 0x122   : > { %5053 = vmatprep.mubr.msk.bf16.mxu1 %vm5509_vm1, %v5508_v2  ;;  %5057 = vmatprep.subr.bf16.mxu1 %v5508_v2 }
 0x12b   : > { %5000 = vmatmul.mubr.msk.bf16.vlgmr.msra.gmra.mrb[8].mxu0 %vm328_vm2, %v4487_v26  ;;  %5054 = vmatmul.mubr.msk.bf16.vlgmr.msra.gmra.mrb[8].mxu1 %vm328_vm2, %v4520_v27  ;;  %v3933_v26 = vsel %vm332_vm0, %v4579_v22, 0  ;;  %v4550_v27 = vld [vmem:[%s6262_s4 + $0xa] sm:$0x3] }
 0x12c   : > { %5004 = vmatpush3.bf16.msra.mxu0 %v2643_v28  ;;  %5058 = vmatpush3.bf16.msra.mxu1 %v3127_v29  ;;  %v4583_v28 = vld [vmem:[%s6262_s4 + $0xa] sm:$0x3]  ;;  %v5480_v29 = vld [vmem:[%s5610_s14 + $0x30] sm:$0x1f]   ;;  %v3511_v33 = vsel %vm332_vm0, %v4550_v27, 0 }
 0x12d   : > { %5005 = vmatprep.mubr.msk.bf16.mxu0 %vm5509_vm1, %v5508_v2  ;;  %5009 = vmatprep.subr.bf16.mxu0 %v5508_v2 }
 0x12e   : > { %5059 = vmatprep.mubr.msk.bf16.mxu1 %vm5509_vm1, %v5508_v2  ;;  %5063 = vmatprep.subr.bf16.mxu1 %v5508_v2 }
 0x137   : > { %5006 = vmatmul.mubr.msk.bf16.vlgmr.msra.gmra.mrb[8].mxu0 %vm328_vm2, %v4490_v34  ;;  %5060 = vmatmul.mubr.msk.bf16.vlgmr.msra.gmra.mrb[8].mxu1 %vm328_vm2, %v4523_v35  ;;  %v3995_v34 = vsel %vm332_vm0, %v4583_v28, 0  ;;  %v3503_v35 = vshll.u32 %v5480_v29, 16 }
 0x138   : > { %5010 = vmatpush3.bf16.msra.mxu0 %v2705_v36  ;;  %5064 = vmatpush3.bf16.msra.mxu1 %v3189_v37  ;;  %v3987_v36 = vshll.u32 %v5481_v30, 16  ;;  %v3501_v37 = vshrl.u32 %v5480_v29, 16 }
 0x139   : > { %5011 = vmatprep.mubr.msk.bf16.mxu0 %vm5509_vm1, %v5508_v2  ;;  %5065 = vmatprep.mubr.msk.bf16.mxu1 %vm5509_vm1, %v5508_v2  ;;  %v3505_v38 = vrot.slane %v3503_v35, 1 }
 0x13a   : > { %5069 = vmatprep.subr.bf16.mxu0 %v5508_v2  ;;  %5123 = vmatprep.subr.bf16.mxu1 %v5508_v2  ;;  %v3989_v40 = vrot.slane %v3987_v36, 1 }
 0x13b   : > { %v3506_v43 = vor.u32 %v3505_v38, %v3501_v37 }
 0x13c   : > { %v3990_v44 = vor.u32 %v3989_v40, %v3985_v39 }
 0x143   : > { %5012 = vmatmul.mubr.msk.bf16.vlgmr.msra.gmra.mrb[8].mxu0 %vm328_vm2, %v2700_v46  ;;  %5066 = vmatmul.mubr.msk.bf16.vlgmr.msra.gmra.mrb[8].mxu1 %vm328_vm2, %v3184_v47  ;;  %v4045_v46 = vsel %vm332_vm0, %v4587_v42, 0  ;;  %v4557_v47 = vld [vmem:[%s6262_s4 + $0xe] sm:$0x3] }
 0x144   : > { %5070 = vmatpush3.bf16.msra.mxu0 %v3242_v48  ;;  %5124 = vmatpush3.bf16.msra.mxu1 %v3726_v49  ;;  %v4590_v48 = vld [vmem:[%s6262_s4 + $0xe] sm:$0x3]  ;;  %v4553_v49 = vld [vmem:[%s5597_s11 + $0x38] sm:$0xf] }
 0x145   : > { %5071 = vmatprep.mubr.msk.bf16.mxu0 %vm5509_vm1, %v5508_v2  ;;  %5075 = vmatprep.subr.bf16.mxu0 %v5508_v2  ;;  %v4095_v52 = vsel %vm332_vm0, %v4590_v48, 0 }
 0x146   : > { %v806_v50 = vpop.f32.mrb[0].mxu0  ;;  %v1289_v51 = vpop.f32.mrb[0].mxu1  ;;  %5125 = vmatprep.mubr.msk.bf16.mxu1 %vm5509_vm1, %v5508_v2  ;;  %5129 = vmatprep.subr.bf16.mxu1 %v5508_v2 }
 0x147   : > { %813 = vst [vmem:[%s6087_s26] sm:$0xff] %v806_v50  ;;  %4399 = vst [vmem:[%s6087_s26 + $0x8] sm:$0xff] %v1289_v51  ;;  %v4797_v54 = vpop.f32.mrb[1].mxu0  ;;  %v4851_v55 = vpop.f32.mrb[1].mxu1  ;;  %v4586_v50 = vld [vmem:[%s5597_s11 + $0x40] sm:$0xf]  ;;  %v3611_v51 = vsel %vm332_vm0, %v4557_v47, 0 }
 0x148   : > { %v809_v56 = vpop.f32.mrb[2].mxu0  ;;  %v1292_v57 = vpop.f32.mrb[2].mxu1  ;;  %v4594_v54 = vld [vmem:[%s6262_s4 + $0x10] sm:$0x3]  ;;  %v5482_v55 = vld [vmem:[%s5597_s11 + $0x38] sm:$0x1f]  }
 0x149   : > { %v4798_v60 = vpop.f32.mrb[3].mxu0  ;;  %v4852_v61 = vpop.f32.mrb[3].mxu1  ;;  %v5483_v56 = vld [vmem:[%s5597_s11 + $0x40] sm:$0x1f]   ;;  %v4556_v57 = vld [vmem:[%s5589_s8 + $0x38] sm:$0xf] }
 0x14a   : > { %v4157_v60 = vsel %vm332_vm0, %v4594_v54, 0  ;;  %v3665_v61 = vshll.u32 %v5482_v55, 16  ;;  %v4147_v1 = vshrl.u32 %v5483_v56, 16 }
 0x14b   : > { %5072 = vmatmul.mubr.msk.bf16.vlgmr.msra.gmra.mrb[12].mxu0 %vm328_vm2, %v4533_v58  ;;  %5126 = vmatmul.mubr.msk.bf16.vlgmr.msra.gmra.mrb[12].mxu1 %vm328_vm2, %v4566_v59  ;;  %v4589_v58 = vld [vmem:[%s5589_s8 + $0x40] sm:$0xf]  ;;  %v3673_v59 = vsel %vm332_vm0, %v4561_v53, 0 }
 0x14c   : > { %5076 = vmatpush3.bf16.msra.mxu0 %v3288_v62  ;;  %5130 = vmatpush3.bf16.msra.mxu1 %v3772_v63  ;;  %v4149_v62 = vshll.u32 %v5483_v56, 16  ;;  %v3663_v63 = vshrl.u32 %v5482_v55, 16  ;;  %v3667_v0 = vrot.slane %v3665_v61, 1 }
 0x14d   : > { %5077 = vmatprep.mubr.msk.bf16.mxu0 %vm5509_vm1, %v5508_v2  ;;  %5081 = vmatprep.subr.bf16.mxu0 %v5508_v2 }
 0x14e   : > { %5131 = vmatprep.mubr.msk.bf16.mxu1 %vm5509_vm1, %v5508_v2  ;;  %5135 = vmatprep.subr.bf16.mxu1 %v5508_v2  ;;  %v4151_v3 = vrot.slane %v4149_v62, 1  ;;  %v3668_v4 = vor.u32 %v3667_v0, %v3663_v63 }
 0x157   : > { %5078 = vmatmul.mubr.msk.bf16.vlgmr.msra.gmra.mrb[12].mxu0 %vm328_vm2, %v4532_v5  ;;  %5132 = vmatmul.mubr.msk.bf16.vlgmr.msra.gmra.mrb[12].mxu1 %vm328_vm2, %v4565_v6  ;;  %v4152_v5 = vor.u32 %v4151_v3, %v4147_v1 }
 0x158   : > { %5082 = vmatpush3.bf16.msra.mxu0 %v3349_v7  ;;  %5136 = vmatpush3.bf16.msra.mxu1 %v3833_v8 }
 0x159   : > { %5083 = vmatprep.mubr.msk.bf16.mxu0 %vm5509_vm1, %v5508_v2  ;;  %5087 = vmatprep.subr.bf16.mxu0 %v5508_v2 }
 0x15a   : > { %5137 = vmatprep.mubr.msk.bf16.mxu1 %vm5509_vm1, %v5508_v2  ;;  %5141 = vmatprep.subr.bf16.mxu1 %v5508_v2 }
 0x163   : > { %5084 = vmatmul.mubr.msk.bf16.vlgmr.msra.gmra.mrb[12].mxu0 %vm328_vm2, %v3344_v17  ;;  %5138 = vmatmul.mubr.msk.bf16.vlgmr.msra.gmra.mrb[12].mxu1 %vm328_vm2, %v3828_v18 }
 0x164   : > { %5088 = vmatpush3.bf16.msra.mxu0 %v3399_v19  ;;  %5142 = vmatpush3.bf16.msra.mxu1 %v3883_v20 }
 0x165   : > { %5089 = vmatprep.mubr.msk.bf16.mxu0 %vm5509_vm1, %v5508_v2  ;;  %5093 = vmatprep.subr.bf16.mxu0 %v5508_v2 }
 0x166   : > { %5143 = vmatprep.mubr.msk.bf16.mxu1 %vm5509_vm1, %v5508_v2  ;;  %5147 = vmatprep.subr.bf16.mxu1 %v5508_v2 }
 0x16f   : > { %5090 = vmatmul.mubr.msk.bf16.vlgmr.msra.gmra.mrb[12].mxu0 %vm328_vm2, %v4542_v23  ;;  %5144 = vmatmul.mubr.msk.bf16.vlgmr.msra.gmra.mrb[12].mxu1 %vm328_vm2, %v4575_v24 }
 0x170   : > { %5094 = vmatpush3.bf16.msra.mxu0 %v3449_v25  ;;  %5148 = vmatpush3.bf16.msra.mxu1 %v3933_v26 }
 0x171   : > { %5095 = vmatprep.mubr.msk.bf16.mxu0 %vm5509_vm1, %v5508_v2  ;;  %5099 = vmatprep.subr.bf16.mxu0 %v5508_v2 }
 0x172   : > { %5149 = vmatprep.mubr.msk.bf16.mxu1 %vm5509_vm1, %v5508_v2  ;;  %5153 = vmatprep.subr.bf16.mxu1 %v5508_v2 }
 0x17b   : > { %5096 = vmatmul.mubr.msk.bf16.vlgmr.msra.gmra.mrb[12].mxu0 %vm328_vm2, %v4545_v31  ;;  %5150 = vmatmul.mubr.msk.bf16.vlgmr.msra.gmra.mrb[12].mxu1 %vm328_vm2, %v4578_v32 }
 0x17c   : > { %5100 = vmatpush3.bf16.msra.mxu0 %v3511_v33  ;;  %5154 = vmatpush3.bf16.msra.mxu1 %v3995_v34 }
 0x17d   : > { %5101 = vmatprep.mubr.msk.bf16.mxu0 %vm5509_vm1, %v5508_v2  ;;  %5105 = vmatprep.subr.bf16.mxu0 %v5508_v2 }
 0x17e   : > { %5155 = vmatprep.mubr.msk.bf16.mxu1 %vm5509_vm1, %v5508_v2  ;;  %5159 = vmatprep.subr.bf16.mxu1 %v5508_v2 }
 0x187   : > { %5102 = vmatmul.mubr.msk.bf16.vlgmr.msra.gmra.mrb[12].mxu0 %vm328_vm2, %v3506_v43  ;;  %5156 = vmatmul.mubr.msk.bf16.vlgmr.msra.gmra.mrb[12].mxu1 %vm328_vm2, %v3990_v44 }
 0x188   : > { %5106 = vmatpush3.bf16.msra.mxu0 %v3561_v45  ;;  %5160 = vmatpush3.bf16.msra.mxu1 %v4045_v46 }
 0x189   : > { %5107 = vmatprep.mubr.msk.bf16.mxu0 %vm5509_vm1, %v5508_v2  ;;  %5111 = vmatprep.subr.bf16.mxu0 %v5508_v2 }
 0x18a   : > { %5161 = vmatprep.mubr.msk.bf16.mxu1 %vm5509_vm1, %v5508_v2  ;;  %5165 = vmatprep.subr.bf16.mxu1 %v5508_v2 }
 0x193   : > { %5108 = vmatmul.mubr.msk.bf16.vlgmr.msra.gmra.mrb[12].mxu0 %vm328_vm2, %v4553_v49  ;;  %5162 = vmatmul.mubr.msk.bf16.vlgmr.msra.gmra.mrb[12].mxu1 %vm328_vm2, %v4586_v50 }
 0x194   : > { %5112 = vmatpush3.bf16.msra.mxu0 %v3611_v51  ;;  %5166 = vmatpush3.bf16.msra.mxu1 %v4095_v52 }
 0x195   : > { %5113 = vmatprep.mubr.msk.bf16.mxu0 %vm5509_vm1, %v5508_v2  ;;  %5117 = vmatprep.subr.bf16.mxu0 %v5508_v2 }
 0x196   : > { %5167 = vmatprep.mubr.msk.bf16.mxu1 %vm5509_vm1, %v5508_v2  ;;  %5171 = vmatprep.subr.bf16.mxu1 %v5508_v2 }
 0x19f   : > { %5114 = vmatmul.mubr.msk.bf16.vlgmr.msra.gmra.mrb[12].mxu0 %vm328_vm2, %v4556_v57  ;;  %5168 = vmatmul.mubr.msk.bf16.vlgmr.msra.gmra.mrb[12].mxu1 %vm328_vm2, %v4589_v58 }
 0x1a0   : > { %5118 = vmatpush3.bf16.msra.mxu0 %v3673_v59  ;;  %5172 = vmatpush3.bf16.msra.mxu1 %v4157_v60 }
 0x1a1   : > { %5119 = vmatprep.mubr.msk.bf16.mxu0 %vm5509_vm1, %v5508_v2  ;;  %5173 = vmatprep.mubr.msk.bf16.mxu1 %vm5509_vm1, %v5508_v2 }
 0x1ab   : > { %5120 = vmatmul.mubr.msk.bf16.vlgmr.msra.gmra.mrb[12].mxu0 %vm328_vm2, %v3668_v4  ;;  %5174 = vmatmul.mubr.msk.bf16.vlgmr.msra.gmra.mrb[12].mxu1 %vm328_vm2, %v4152_v5 }
 0x1ae   : > { %v1773_v6 = vpop.f32.mrb[4].mxu0  ;;  %v2257_v7 = vpop.f32.mrb[4].mxu1 }
 0x1af   : > { %4432 = vst [vmem:[%s6087_s26 + $0x10] sm:$0xff] %v1773_v6  ;;  %4465 = vst [vmem:[%s6087_s26 + $0x18] sm:$0xff] %v2257_v7  ;;  %v4905_v8 = vpop.f32.mrb[5].mxu0  ;;  %v4959_v9 = vpop.f32.mrb[5].mxu1 }
 0x1b0   : > { %v1776_v10 = vpop.f32.mrb[6].mxu0  ;;  %v2260_v2 = vpop.f32.mrb[6].mxu1 }
 0x1b1   : > { %v4906_v11 = vpop.f32.mrb[7].mxu0  ;;  %v4960_v12 = vpop.f32.mrb[7].mxu1 }
 0x216   : > { %v2741_v13 = vpop.f32.mrb[8].mxu0  ;;  %v3225_v14 = vpop.f32.mrb[8].mxu1 }
 0x217   : > { %4498 = vst [vmem:[%s6087_s26 + $0x20] sm:$0xff] %v2741_v13  ;;  %4531 = vst [vmem:[%s6087_s26 + $0x28] sm:$0xff] %v3225_v14  ;;  %v5013_v15 = vpop.f32.mrb[9].mxu0  ;;  %v5067_v16 = vpop.f32.mrb[9].mxu1 }
 0x218   : > { %v2744_v17 = vpop.f32.mrb[10].mxu0  ;;  %v3228_v18 = vpop.f32.mrb[10].mxu1 }
 0x219   : > { %v5014_v19 = vpop.f32.mrb[11].mxu0  ;;  %v5068_v20 = vpop.f32.mrb[11].mxu1 }
 0x27e   : > { %v3709_v21 = vpop.f32.mrb[12].mxu0  ;;  %v4193_v22 = vpop.f32.mrb[12].mxu1 }
 0x27f   : > { %4564 = vst [vmem:[%s6087_s26 + $0x30] sm:$0xff] %v3709_v21  ;;  %4597 = vst [vmem:[%s6087_s26 + $0x38] sm:$0xff] %v4193_v22  ;;  %v5121_v23 = vpop.f32.mrb[13].mxu0  ;;  %v5175_v24 = vpop.f32.mrb[13].mxu1 }
 0x280   : > { %v3712_v25 = vpop.f32.mrb[14].mxu0  ;;  %v4196_v26 = vpop.f32.mrb[14].mxu1 }
 0x281   : > { %v5122_v27 = vpop.f32.mrb[15].mxu0  ;;  %v5176_v28 = vpop.f32.mrb[15].mxu1 }
 0x282 PF: > { %s15_s20 = sadd.s32 1, %s5506_s20   ;;  %s6264_s18 = smov %s5502_s19 }
 0x283   : > { %p12_p5 = scmp.ge.s32.totalorder %s15_s20, 4   ;;  %s6265_s19 = smov %s6267_s21 }
 0x285   :  { %14 = sbr.rel (!%p12_p5) target bundleno = 2 (0x2), region = 127 }

</bundles_post_ra>
